<compile_context>
chip_gen: v7x
topology: tpu7x:2x2x1
jax: 0.10.0
libtpu: 0.0.40
codegen_flags: <defaults>
</compile_context>

<pallas_src>
import numpy as np
import jax
import jax.numpy as jnp
from jax import lax
from jax.experimental import pallas as pl
from jax.experimental.pallas import tpu as pltpu

# ----- small, self-consistent hyperparameters (mirroring DecodeCNN.__init__) -----
B = 2
IN_SIZE = 8
HIDDEN = 32             # hidden_size
N_MLP = 2
CNN_SIZE = (8, 8)       # cnn_size
CHANNELS = 4
N_LAYERS = 2
OUT_SIZE = (3, 24, 24)  # len==3 -> keep channel dim, crop spatial
KERNEL = 4              # args.kernel
DILATION = 1            # args.dilation -> dil=1, pad=2, out_pad=0
STRIDE = 2
BN_EPS = 1e-5

assert N_MLP == 2       # fused kernel hardcodes Linear->BN->ReLU->Linear
assert N_LAYERS == 2    # fused A0/A1 construction hardcodes the 2-layer conv stack

H_IMG, W_IMG = CNN_SIZE
MLP_OUT = H_IMG * W_IMG          # 64
CH = CHANNELS                    # 4
CO = OUT_SIZE[0]                 # 3
H_TAKE, W_TAKE = OUT_SIZE[1], OUT_SIZE[2]


def _convt_out(n, k, s, p, d, op):
    return (n - 1) * s - 2 * p + d * (k - 1) + op + 1


def _build_conv_cfgs():
    """Static per-layer config (mirrors DecodeCNN.__init__)."""
    cfgs = []
    h, w = CNN_SIZE
    for l in range(N_LAYERS):
        dil = (2 ** (N_LAYERS - 1 - l)) if DILATION == 3 else DILATION
        pad = 3 * (dil + 1)
        if DILATION == 1:
            pad = 2
        out_pad = pad % 2
        c_in = 1 if l == 0 else CHANNELS
        c_out = OUT_SIZE[0] if l == N_LAYERS - 1 else CHANNELS
        h_out = _convt_out(h, KERNEL, STRIDE, pad, dil, out_pad)
        w_out = _convt_out(w, KERNEL, STRIDE, pad, dil, out_pad)
        # the fused matrices rely on the k=4 / s=2 / p=2 / d=1 / op=0 sub-pixel structure
        assert (KERNEL, STRIDE, pad, dil, out_pad) == (4, 2, 2, 1, 0)
        assert h_out == 2 * h - 2 and w_out == 2 * w - 2
        cfgs.append(dict(dil=dil, pad=pad, out_pad=out_pad, c_in=c_in, c_out=c_out,
                         h_in=h, w_in=w, h_out=h_out, w_out=w_out,
                         hq=h_out // 2, wq=w_out // 2))
        h, w = h_out, w_out
    assert OUT_SIZE[1] <= cfgs[-1]['h_out'] and OUT_SIZE[2] <= cfgs[-1]['w_out']
    return cfgs


conv_cfgs = _build_conv_cfgs()

HQ0 = conv_cfgs[0]['hq']              # 7   layer-0 output quarter rows
L1_W = conv_cfgs[0]['w_out']          # 14  layer-1 input width
HQ1 = conv_cfgs[1]['hq']              # 13  layer-1 output quarter rows
IMG_LANES = L1_W * CH                 # 56  layer-1 input lanes:  lane = w1*CH + ci
UQ = H_TAKE // 4                      # 6   output rows per (h-parity v, h-parity ph) block
assert H_TAKE % 4 == 0
assert (H_TAKE - 1) // 2 <= HQ1 - 1   # cropped rows never touch the last quarter row
assert CO * W_TAKE <= 128             # each ph block fits in one 128-lane tile (lane-dense out)

# ---- packed parameter buffer layout (single VMEM input; all offsets 8-row aligned) ----
A0_ROWS, A0_COLS = 2 * W_IMG, 2 * IMG_LANES       # (16, 112)
A1_ROWS, A1_COLS = 2 * IMG_LANES, 256             # (112, 256)
O_W0, O_B0, O_W1, O_B1 = 0, 8, 16, 48
O_A0, O_A1, O_SV = 56, 72, 184
PACK_ROWS, PACK_LANES = 192, 256


# ---------------- the single fused kernel (8 matmuls, no scratch, no grid) ----------------

def decode_cnn_kernel(x_ref, p_ref, o_ref):
    HI = lax.Precision.HIGHEST

    # Static views into the single packed VMEM parameter buffer (free).
    W0 = p_ref[O_W0:O_W0 + IN_SIZE, 0:HIDDEN]
    b0 = p_ref[O_B0:O_B0 + 1, 0:HIDDEN]
    W1 = p_ref[O_W1:O_W1 + HIDDEN, 0:MLP_OUT]
    b1 = p_ref[O_B1:O_B1 + 1, 0:MLP_OUT]
    A0 = p_ref[O_A0:O_A0 + A0_ROWS, 0:A0_COLS]
    A1 = p_ref[O_A1:O_A1 + A1_ROWS, 0:A1_COLS]
    sv = p_ref[O_SV:O_SV + 1, 0:A1_COLS]

    # ---- MLP: Linear -> folded eval-BatchNorm1d -> ReLU -> (Dropout=id) -> Linear
    h = jnp.dot(x_ref[...], W0, preferred_element_type=jnp.float32, precision=HI) + b0
    h = jnp.maximum(h, 0.0)
    y = jnp.dot(h, W1, preferred_element_type=jnp.float32, precision=HI) + b1      # (B, 64)

    # ---- .view(-1, 1, 8, 8): single lane->sublane relayout of one vreg of data
    x0 = jnp.stack([y[:, i * W_IMG:(i + 1) * W_IMG] for i in range(H_IMG)], axis=1)  # (B, 8, 8)

    for b in range(B):
        xb = x0[b]                                                                   # (8, 8)
        # Layer 0 (ConvTranspose2d + BN fold + W-parity interleave), fused into one matmul:
        # LHS lanes = [rows q (sh=0) | rows q+1 (sh=1)], A0 maps them to the parity-separated
        # layer-1 input:   L0[q, ph*56 + w1*4 + ci] = conv0_bn(out)[ci, 2q+ph, w1]  (shift folded
        # downstream).
        X0 = jnp.concatenate([xb[0:H_IMG - 1, :], xb[1:H_IMG, :]], axis=1)           # (7, 16)
        L0 = jnp.dot(X0, A0, preferred_element_type=jnp.float32, precision=HI)       # (7, 112)
        img_e = L0[:, 0:IMG_LANES]            # even rows  h1 = 2a
        img_o = L0[:, IMG_LANES:2 * IMG_LANES]  # odd rows h1 = 2a+1

        # Layer 1 (ConvTranspose2d + W-parity interleave + crop + lane-dense pad), one matmul
        # per output-row parity v (q1 = 2u+v):  A1 columns = ph2*128 + co*24 + w2.
        for v in range(2):
            if v == 0:
                X1 = jnp.concatenate([img_e[0:UQ, :], img_o[0:UQ, :]], axis=1)       # (6, 112)
            else:
                X1 = jnp.concatenate([img_o[0:UQ, :], img_e[1:UQ + 1, :]], axis=1)   # (6, 112)
            Z = jnp.dot(X1, A1, preferred_element_type=jnp.float32, precision=HI)    # (6, 256)
            # + per-(channel, parity) shift (conv biases + BN shifts, layer-0 shift folded
            #   through layer 1); full-256-lane store -> no masked partial lane stores.
            o_ref[b, v, :, :] = Z + sv


# ---------------- wrapper ----------------

def decode_cnn_forward(x, packed):
    out_k = pl.pallas_call(
        decode_cnn_kernel,
        out_shape=jax.ShapeDtypeStruct((B, 2, UQ, 256), jnp.float32),
        in_specs=[pl.BlockSpec(memory_space=pltpu.MemorySpace.VMEM),
                  pl.BlockSpec(memory_space=pltpu.MemorySpace.VMEM)],
        out_specs=pl.BlockSpec(memory_space=pltpu.MemorySpace.VMEM),
        # working set ~220 KB -> far below VMEM on v5e/v6e (128 MiB) and v7x (64 MiB)
    )(x, packed)
    # Lane-dense kernel slab -> NCHW cropped output (tiny 24 KB relayout, per review item 7).
    # out_k[b, v, u, ph*128 + co*24 + w2] = out[b, co, h2 = 4u + 2v + ph, w2]
    z = out_k.reshape(B, 2, UQ, 2, 128)[..., :CO * W_TAKE]
    z = z.reshape(B, 2, UQ, 2, CO, W_TAKE)                 # (b, v, u, ph, co, w)
    return z.transpose(0, 4, 2, 1, 3, 5).reshape(B, CO, H_TAKE, W_TAKE)


# ---------------- one-time parameter preparation (hoisted out of the hot path) ----------------

def prepare_params(p):
    """Fold eval-mode BatchNorm (real running stats) and all biases, pre-compose each conv layer's
    sub-pixel taps with the W-parity interleave / crop selectors, and pack everything into ONE
    (192, 256) f32 VMEM buffer."""
    f32 = np.float32
    eps = BN_EPS

    # MLP fold (BatchNorm1d eval).
    W0 = np.asarray(p['W0'], f32); b0 = np.asarray(p['b0'], f32)
    s1 = np.asarray(p['bn1_g'], f32) / np.sqrt(np.asarray(p['bn1_rv'], f32) + eps)
    W0e = W0 * s1[None, :]
    b0e = (b0 - np.asarray(p['bn1_rm'], f32)) * s1 + np.asarray(p['bn1_b'], f32)
    W1 = np.asarray(p['W1'], f32); b1 = np.asarray(p['b1'], f32)

    # Conv layer 0: fold BatchNorm2d eval into the weights; keep the additive shift separately.
    w0 = np.asarray(p['conv0_w'], f32)                 # (1, CH, 4, 4)   PyTorch (Cin, Cout, kH, kW)
    s0 = np.asarray(p['bn2_0_g'], f32) / np.sqrt(np.asarray(p['bn2_0_rv'], f32) + eps)
    w0e = w0 * s0[None, :, None, None]
    shift0 = (np.asarray(p['conv0_b'], f32) - np.asarray(p['bn2_0_rm'], f32)) * s0 \
        + np.asarray(p['bn2_0_b'], f32)                # per layer-1 input channel

    w1c = np.asarray(p['conv1_w'], f32)                # (CH, CO, 4, 4)
    cb1 = np.asarray(p['conv1_b'], f32)                # (CO,)

    # A0: (16, 112).  Row = sh*8 + w_in,  Col = ph*56 + w1*4 + co   (w1 = 2r + pw).
    # ConvTranspose sub-pixel identity (k=4,s=2,p=2): out[co, 2q+ph, 2r+pw] =
    #   sum_{sh,sw,ci} x[ci, q+sh, r+sw] * w[ci, co, ph+2(1-sh), pw+2(1-sw)].
    A0 = np.zeros((A0_ROWS, A0_COLS), f32)
    for sh in range(2):
        for sw in range(2):
            for ph in range(2):
                for pw in range(2):
                    for co in range(CH):
                        wv = w0e[0, co, ph + 2 * (1 - sh), pw + 2 * (1 - sw)]
                        for r in range(HQ0):
                            A0[sh * W_IMG + (r + sw),
                               ph * IMG_LANES + (2 * r + pw) * CH + co] += wv

    # A1: (112, 256).  Row = sh1*56 + w1_in*4 + ci,  Col = ph2*128 + co*24 + w2  (w2 = 2r+pw2<24).
    A1 = np.zeros((A1_ROWS, A1_COLS), f32)
    for sh in range(2):
        for sw in range(2):
            for ph in range(2):
                for pw in range(2):
                    for ci in range(CH):
                        for co in range(CO):
                            wv = w1c[ci, co, ph + 2 * (1 - sh), pw + 2 * (1 - sw)]
                            for r in range(HQ1):
                                w2 = 2 * r + pw
                                if w2 >= W_TAKE:
                                    continue
                                A1[sh * IMG_LANES + (r + sw) * CH + ci,
                                   ph * 128 + co * W_TAKE + w2] += wv

    # Output shift row: conv1 bias + layer-0 shift folded through conv1's 4 taps (exact: every
    # output element sees all 4 taps and there is NO ReLU in the conv stack - the module quirk).
    sv = np.zeros((1, A1_COLS), f32)
    for ph in range(2):
        for pw in range(2):
            for co in range(CO):
                extra = 0.0
                for ci in range(CH):
                    acc = 0.0
                    for sh in range(2):
                        for sw in range(2):
                            acc += w1c[ci, co, ph + 2 * (1 - sh), pw + 2 * (1 - sw)]
                    extra += shift0[ci] * acc
                val = cb1[co] + extra
                for w2 in range(pw, W_TAKE, 2):
                    sv[0, ph * 128 + co * W_TAKE + w2] = val

    # Pack everything into one VMEM buffer (8-row-aligned static slices in-kernel).
    P = np.zeros((PACK_ROWS, PACK_LANES), f32)
    P[O_W0:O_W0 + IN_SIZE, 0:HIDDEN] = W0e
    P[O_B0, 0:HIDDEN] = b0e
    P[O_W1:O_W1 + HIDDEN, 0:MLP_OUT] = W1
    P[O_B1, 0:MLP_OUT] = b1
    P[O_A0:O_A0 + A0_ROWS, 0:A0_COLS] = A0
    P[O_A1:O_A1 + A1_ROWS, 0:A1_COLS] = A1
    P[O_SV, 0:A1_COLS] = sv[0]
    return jnp.asarray(P)


# ---------------- pure-JAX reference (for correctness check) ----------------

def reference_forward(x, p):
    eps = BN_EPS
    h = jnp.dot(x, p['W0'], precision=lax.Precision.HIGHEST) + p['b0']
    h = (h - p['bn1_rm']) / jnp.sqrt(p['bn1_rv'] + eps) * p['bn1_g'] + p['bn1_b']
    h = jnp.maximum(h, 0.0)                                              # ReLU; Dropout = id
    y = jnp.dot(h, p['W1'], precision=lax.Precision.HIGHEST) + p['b1']
    out = y.reshape(x.shape[0], 1, CNN_SIZE[0], CNN_SIZE[1])
    for l, cfg in enumerate(conv_cfgs):
        w = p[f'conv{l}_w']                  # (Cin, Cout, kH, kW)
        kH, kW = w.shape[2], w.shape[3]
        w_oihw = jnp.transpose(w[:, :, ::-1, ::-1], (1, 0, 2, 3))
        padl_h = cfg['dil'] * (kH - 1) - cfg['pad']
        padl_w = cfg['dil'] * (kW - 1) - cfg['pad']
        out = lax.conv_general_dilated(
            out, w_oihw, window_strides=(1, 1),
            padding=[(padl_h, padl_h + cfg['out_pad']),
                     (padl_w, padl_w + cfg['out_pad'])],
            lhs_dilation=(STRIDE, STRIDE), rhs_dilation=(cfg['dil'], cfg['dil']),
            dimension_numbers=('NCHW', 'OIHW', 'NCHW'),
            precision=lax.Precision.HIGHEST)
        out = out + p[f'conv{l}_b'].reshape(1, -1, 1, 1)
        if l < N_LAYERS - 1:
            rm = p[f'bn2_{l}_rm'].reshape(1, -1, 1, 1)
            rv = p[f'bn2_{l}_rv'].reshape(1, -1, 1, 1)
            g = p[f'bn2_{l}_g'].reshape(1, -1, 1, 1)
            be = p[f'bn2_{l}_b'].reshape(1, -1, 1, 1)
            out = (out - rm) / jnp.sqrt(rv + eps) * g + be
            # no ReLU (replaced by Dropout2d via duplicate module name); Dropout2d = id (eval)
    return out[:, :, :OUT_SIZE[1], :OUT_SIZE[2]]


# ---------------- deterministic parameter construction ----------------

def build_params(key):
    keys = iter(jax.random.split(key, 32))

    def u(shape, lo=-0.1, hi=0.1):
        return jax.random.uniform(next(keys), shape, jnp.float32, lo, hi)

    p = {
        'W0': u((IN_SIZE, HIDDEN)),
        'b0': u((HIDDEN,)),
        'bn1_g': u((HIDDEN,)) + 1.0,
        'bn1_b': u((HIDDEN,)),
        'bn1_rm': u((HIDDEN,)),
        'bn1_rv': u((HIDDEN,), 0.9, 1.1),
        'W1': u((HIDDEN, MLP_OUT)),
        'b1': u((MLP_OUT,)),
    }
    for l, cfg in enumerate(conv_cfgs):
        p[f'conv{l}_w'] = u((cfg['c_in'], cfg['c_out'], KERNEL, KERNEL))
        p[f'conv{l}_b'] = u((cfg['c_out'],))
        if l < N_LAYERS - 1:
            p[f'bn2_{l}_g'] = u((cfg['c_out'],)) + 1.0
            p[f'bn2_{l}_b'] = u((cfg['c_out'],))
            p[f'bn2_{l}_rm'] = u((cfg['c_out'],))
            p[f'bn2_{l}_rv'] = u((cfg['c_out'],), 0.9, 1.1)
    return p


if __name__ == "__main__":
    root = jax.random.PRNGKey(0)
    pkey, xkey = jax.random.split(root)
    params = build_params(pkey)
    packed = prepare_params(params)
    x = jax.random.normal(xkey, (B, IN_SIZE), jnp.float32)

    fwd = jax.jit(decode_cnn_forward)
    out = jax.block_until_ready(fwd(x, packed))

    ref = reference_forward(x, params)
    assert out.shape == (B,) + tuple(OUT_SIZE), out.shape
    # All 8 in-kernel matmuls run at HIGHEST (cheap at 2-13 LHS rows), BN/bias folds are exact
    # algebra -> only accumulation-order noise vs the f32 reference (~1e-6); tolerance still
    # catches any structural bug by orders of magnitude.
    np.testing.assert_allclose(np.asarray(out), np.asarray(ref), rtol=1e-3, atol=1e-4)

    print("KERNEL_OK")
</pallas_src>

<mosaic_0001>
module attributes {stable_mosaic.version = 11 : i64} {
  func.func @decode_cnn_kernel(%arg0: memref<2x8xf32, #tpu.memory_space<vmem>>, %arg1: memref<192x256xf32, #tpu.memory_space<vmem>>, %arg2: memref<2x2x6x256xf32, #tpu.memory_space<vmem>>) attributes {dimension_semantics = [], scalar_prefetch = 0 : i64, scratch_operands = 0 : i64, tpu.core_type = #tpu.core_type<tc>} {
    %c0 = arith.constant 0 : index
    %c0_0 = arith.constant 0 : index
    %0 = vector.load %arg1[%c0, %c0_0] : memref<192x256xf32, #tpu.memory_space<vmem>>, vector<8x32xf32>
    %c8 = arith.constant 8 : index
    %c0_1 = arith.constant 0 : index
    %1 = vector.load %arg1[%c8, %c0_1] : memref<192x256xf32, #tpu.memory_space<vmem>>, vector<1x32xf32>
    %c16 = arith.constant 16 : index
    %c0_2 = arith.constant 0 : index
    %2 = vector.load %arg1[%c16, %c0_2] : memref<192x256xf32, #tpu.memory_space<vmem>>, vector<32x64xf32>
    %c48 = arith.constant 48 : index
    %c0_3 = arith.constant 0 : index
    %3 = vector.load %arg1[%c48, %c0_3] : memref<192x256xf32, #tpu.memory_space<vmem>>, vector<1x64xf32>
    %c56 = arith.constant 56 : index
    %c0_4 = arith.constant 0 : index
    %4 = vector.load %arg1[%c56, %c0_4] : memref<192x256xf32, #tpu.memory_space<vmem>>, vector<16x112xf32>
    %c72 = arith.constant 72 : index
    %c0_5 = arith.constant 0 : index
    %5 = vector.load %arg1[%c72, %c0_5] : memref<192x256xf32, #tpu.memory_space<vmem>>, vector<112x256xf32>
    %c184 = arith.constant 184 : index
    %c0_6 = arith.constant 0 : index
    %6 = vector.load %arg1[%c184, %c0_6] : memref<192x256xf32, #tpu.memory_space<vmem>>, vector<1x256xf32>
    %c0_7 = arith.constant 0 : index
    %c0_8 = arith.constant 0 : index
    %7 = vector.load %arg0[%c0_7, %c0_8] : memref<2x8xf32, #tpu.memory_space<vmem>>, vector<2x8xf32>
    %cst = arith.constant dense<0.000000e+00> : vector<2x32xf32>
    %8 = tpu.matmul %7, %0, %cst {dimension_numbers = #tpu.dot_dimension_numbers<[1], [0], [0], [1], [0, 0, 1, 1], [], []>, precision = #tpu.contract_precision<fp32>} : vector<2x8xf32>, vector<8x32xf32>, vector<2x32xf32> -> vector<2x32xf32>
    %9 = vector.broadcast %1 : vector<1x32xf32> to vector<2x32xf32>
    %10 = arith.addf %8, %9 : vector<2x32xf32>
    %cst_9 = arith.constant 0.000000e+00 : f32
    %11 = vector.broadcast %cst_9 : f32 to vector<2x32xf32>
    %12 = arith.maximumf %10, %11 : vector<2x32xf32>
    %cst_10 = arith.constant dense<0.000000e+00> : vector<2x64xf32>
    %13 = tpu.matmul %12, %2, %cst_10 {dimension_numbers = #tpu.dot_dimension_numbers<[1], [0], [0], [1], [0, 0, 1, 1], [], []>, precision = #tpu.contract_precision<fp32>} : vector<2x32xf32>, vector<32x64xf32>, vector<2x64xf32> -> vector<2x64xf32>
    %14 = vector.broadcast %3 : vector<1x64xf32> to vector<2x64xf32>
    %15 = arith.addf %13, %14 : vector<2x64xf32>
    %16 = vector.extract_strided_slice %15 {offsets = [0, 0], sizes = [2, 8], strides = [1, 1]} : vector<2x64xf32> to vector<2x8xf32>
    %17 = vector.extract_strided_slice %15 {offsets = [0, 8], sizes = [2, 8], strides = [1, 1]} : vector<2x64xf32> to vector<2x8xf32>
    %18 = vector.extract_strided_slice %15 {offsets = [0, 16], sizes = [2, 8], strides = [1, 1]} : vector<2x64xf32> to vector<2x8xf32>
    %19 = vector.extract_strided_slice %15 {offsets = [0, 24], sizes = [2, 8], strides = [1, 1]} : vector<2x64xf32> to vector<2x8xf32>
    %20 = vector.extract_strided_slice %15 {offsets = [0, 32], sizes = [2, 8], strides = [1, 1]} : vector<2x64xf32> to vector<2x8xf32>
    %21 = vector.extract_strided_slice %15 {offsets = [0, 40], sizes = [2, 8], strides = [1, 1]} : vector<2x64xf32> to vector<2x8xf32>
    %22 = vector.extract_strided_slice %15 {offsets = [0, 48], sizes = [2, 8], strides = [1, 1]} : vector<2x64xf32> to vector<2x8xf32>
    %23 = vector.extract_strided_slice %15 {offsets = [0, 56], sizes = [2, 8], strides = [1, 1]} : vector<2x64xf32> to vector<2x8xf32>
    %24 = vector.shape_cast %16 : vector<2x8xf32> to vector<2x1x8xf32>
    %25 = vector.shape_cast %17 : vector<2x8xf32> to vector<2x1x8xf32>
    %26 = vector.shape_cast %18 : vector<2x8xf32> to vector<2x1x8xf32>
    %27 = vector.shape_cast %19 : vector<2x8xf32> to vector<2x1x8xf32>
    %28 = vector.shape_cast %20 : vector<2x8xf32> to vector<2x1x8xf32>
    %29 = vector.shape_cast %21 : vector<2x8xf32> to vector<2x1x8xf32>
    %30 = vector.shape_cast %22 : vector<2x8xf32> to vector<2x1x8xf32>
    %31 = vector.shape_cast %23 : vector<2x8xf32> to vector<2x1x8xf32>
    %32 = tpu.concatenate %24, %25, %26, %27, %28, %29, %30, %31 in 1 : vector<2x1x8xf32>, vector<2x1x8xf32>, vector<2x1x8xf32>, vector<2x1x8xf32>, vector<2x1x8xf32>, vector<2x1x8xf32>, vector<2x1x8xf32>, vector<2x1x8xf32> -> vector<2x8x8xf32>
    %33 = vector.extract_strided_slice %32 {offsets = [0, 0, 0], sizes = [1, 8, 8], strides = [1, 1, 1]} : vector<2x8x8xf32> to vector<1x8x8xf32>
    %34 = vector.shape_cast %33 : vector<1x8x8xf32> to vector<8x8xf32>
    %35 = vector.extract_strided_slice %34 {offsets = [0, 0], sizes = [7, 8], strides = [1, 1]} : vector<8x8xf32> to vector<7x8xf32>
    %36 = vector.extract_strided_slice %34 {offsets = [1, 0], sizes = [7, 8], strides = [1, 1]} : vector<8x8xf32> to vector<7x8xf32>
    %37 = tpu.concatenate %35, %36 in 1 : vector<7x8xf32>, vector<7x8xf32> -> vector<7x16xf32>
    %cst_11 = arith.constant dense<0.000000e+00> : vector<7x112xf32>
    %38 = tpu.matmul %37, %4, %cst_11 {dimension_numbers = #tpu.dot_dimension_numbers<[1], [0], [0], [1], [0, 0, 1, 1], [], []>, precision = #tpu.contract_precision<fp32>} : vector<7x16xf32>, vector<16x112xf32>, vector<7x112xf32> -> vector<7x112xf32>
    %39 = vector.extract_strided_slice %38 {offsets = [0, 0], sizes = [7, 56], strides = [1, 1]} : vector<7x112xf32> to vector<7x56xf32>
    %40 = vector.extract_strided_slice %38 {offsets = [0, 56], sizes = [7, 56], strides = [1, 1]} : vector<7x112xf32> to vector<7x56xf32>
    %41 = vector.extract_strided_slice %39 {offsets = [0, 0], sizes = [6, 56], strides = [1, 1]} : vector<7x56xf32> to vector<6x56xf32>
    %42 = vector.extract_strided_slice %40 {offsets = [0, 0], sizes = [6, 56], strides = [1, 1]} : vector<7x56xf32> to vector<6x56xf32>
    %43 = tpu.concatenate %41, %42 in 1 : vector<6x56xf32>, vector<6x56xf32> -> vector<6x112xf32>
    %cst_12 = arith.constant dense<0.000000e+00> : vector<6x256xf32>
    %44 = tpu.matmul %43, %5, %cst_12 {dimension_numbers = #tpu.dot_dimension_numbers<[1], [0], [0], [1], [0, 0, 1, 1], [], []>, precision = #tpu.contract_precision<fp32>} : vector<6x112xf32>, vector<112x256xf32>, vector<6x256xf32> -> vector<6x256xf32>
    %45 = vector.broadcast %6 : vector<1x256xf32> to vector<6x256xf32>
    %46 = arith.addf %44, %45 : vector<6x256xf32>
    %c0_13 = arith.constant 0 : index
    %c0_14 = arith.constant 0 : index
    %c0_15 = arith.constant 0 : index
    %c0_16 = arith.constant 0 : index
    %47 = vector.load %arg2[%c0_13, %c0_14, %c0_15, %c0_16] : memref<2x2x6x256xf32, #tpu.memory_space<vmem>>, vector<1x1x6x256xf32>
    %48 = vector.shape_cast %47 : vector<1x1x6x256xf32> to vector<6x256xf32>
    %49 = vector.shape_cast %46 : vector<6x256xf32> to vector<1x1x6x256xf32>
    tpu.vector_store %arg2[%c0_13, %c0_14, %c0_15, %c0_16], %49 {strides = array<i32>} : memref<2x2x6x256xf32, #tpu.memory_space<vmem>>, vector<1x1x6x256xf32>,
    %50 = vector.extract_strided_slice %40 {offsets = [0, 0], sizes = [6, 56], strides = [1, 1]} : vector<7x56xf32> to vector<6x56xf32>
    %51 = vector.extract_strided_slice %39 {offsets = [1, 0], sizes = [6, 56], strides = [1, 1]} : vector<7x56xf32> to vector<6x56xf32>
    %52 = tpu.concatenate %50, %51 in 1 : vector<6x56xf32>, vector<6x56xf32> -> vector<6x112xf32>
    %cst_17 = arith.constant dense<0.000000e+00> : vector<6x256xf32>
    %53 = tpu.matmul %52, %5, %cst_17 {dimension_numbers = #tpu.dot_dimension_numbers<[1], [0], [0], [1], [0, 0, 1, 1], [], []>, precision = #tpu.contract_precision<fp32>} : vector<6x112xf32>, vector<112x256xf32>, vector<6x256xf32> -> vector<6x256xf32>
    %54 = vector.broadcast %6 : vector<1x256xf32> to vector<6x256xf32>
    %55 = arith.addf %53, %54 : vector<6x256xf32>
    %c0_18 = arith.constant 0 : index
    %c1 = arith.constant 1 : index
    %c0_19 = arith.constant 0 : index
    %c0_20 = arith.constant 0 : index
    %56 = vector.load %arg2[%c0_18, %c1, %c0_19, %c0_20] : memref<2x2x6x256xf32, #tpu.memory_space<vmem>>, vector<1x1x6x256xf32>
    %57 = vector.shape_cast %56 : vector<1x1x6x256xf32> to vector<6x256xf32>
    %58 = vector.shape_cast %55 : vector<6x256xf32> to vector<1x1x6x256xf32>
    tpu.vector_store %arg2[%c0_18, %c1, %c0_19, %c0_20], %58 {strides = array<i32>} : memref<2x2x6x256xf32, #tpu.memory_space<vmem>>, vector<1x1x6x256xf32>,
    %59 = vector.extract_strided_slice %32 {offsets = [1, 0, 0], sizes = [1, 8, 8], strides = [1, 1, 1]} : vector<2x8x8xf32> to vector<1x8x8xf32>
    %60 = vector.shape_cast %59 : vector<1x8x8xf32> to vector<8x8xf32>
    %61 = vector.extract_strided_slice %60 {offsets = [0, 0], sizes = [7, 8], strides = [1, 1]} : vector<8x8xf32> to vector<7x8xf32>
    %62 = vector.extract_strided_slice %60 {offsets = [1, 0], sizes = [7, 8], strides = [1, 1]} : vector<8x8xf32> to vector<7x8xf32>
    %63 = tpu.concatenate %61, %62 in 1 : vector<7x8xf32>, vector<7x8xf32> -> vector<7x16xf32>
    %cst_21 = arith.constant dense<0.000000e+00> : vector<7x112xf32>
    %64 = tpu.matmul %63, %4, %cst_21 {dimension_numbers = #tpu.dot_dimension_numbers<[1], [0], [0], [1], [0, 0, 1, 1], [], []>, precision = #tpu.contract_precision<fp32>} : vector<7x16xf32>, vector<16x112xf32>, vector<7x112xf32> -> vector<7x112xf32>
    %65 = vector.extract_strided_slice %64 {offsets = [0, 0], sizes = [7, 56], strides = [1, 1]} : vector<7x112xf32> to vector<7x56xf32>
    %66 = vector.extract_strided_slice %64 {offsets = [0, 56], sizes = [7, 56], strides = [1, 1]} : vector<7x112xf32> to vector<7x56xf32>
    %67 = vector.extract_strided_slice %65 {offsets = [0, 0], sizes = [6, 56], strides = [1, 1]} : vector<7x56xf32> to vector<6x56xf32>
    %68 = vector.extract_strided_slice %66 {offsets = [0, 0], sizes = [6, 56], strides = [1, 1]} : vector<7x56xf32> to vector<6x56xf32>
    %69 = tpu.concatenate %67, %68 in 1 : vector<6x56xf32>, vector<6x56xf32> -> vector<6x112xf32>
    %cst_22 = arith.constant dense<0.000000e+00> : vector<6x256xf32>
    %70 = tpu.matmul %69, %5, %cst_22 {dimension_numbers = #tpu.dot_dimension_numbers<[1], [0], [0], [1], [0, 0, 1, 1], [], []>, precision = #tpu.contract_precision<fp32>} : vector<6x112xf32>, vector<112x256xf32>, vector<6x256xf32> -> vector<6x256xf32>
    %71 = vector.broadcast %6 : vector<1x256xf32> to vector<6x256xf32>
    %72 = arith.addf %70, %71 : vector<6x256xf32>
    %c1_23 = arith.constant 1 : index
    %c0_24 = arith.constant 0 : index
    %c0_25 = arith.constant 0 : index
    %c0_26 = arith.constant 0 : index
    %73 = vector.load %arg2[%c1_23, %c0_24, %c0_25, %c0_26] : memref<2x2x6x256xf32, #tpu.memory_space<vmem>>, vector<1x1x6x256xf32>
    %74 = vector.shape_cast %73 : vector<1x1x6x256xf32> to vector<6x256xf32>
    %75 = vector.shape_cast %72 : vector<6x256xf32> to vector<1x1x6x256xf32>
    tpu.vector_store %arg2[%c1_23, %c0_24, %c0_25, %c0_26], %75 {strides = array<i32>} : memref<2x2x6x256xf32, #tpu.memory_space<vmem>>, vector<1x1x6x256xf32>,
    %76 = vector.extract_strided_slice %66 {offsets = [0, 0], sizes = [6, 56], strides = [1, 1]} : vector<7x56xf32> to vector<6x56xf32>
    %77 = vector.extract_strided_slice %65 {offsets = [1, 0], sizes = [6, 56], strides = [1, 1]} : vector<7x56xf32> to vector<6x56xf32>
    %78 = tpu.concatenate %76, %77 in 1 : vector<6x56xf32>, vector<6x56xf32> -> vector<6x112xf32>
    %cst_27 = arith.constant dense<0.000000e+00> : vector<6x256xf32>
    %79 = tpu.matmul %78, %5, %cst_27 {dimension_numbers = #tpu.dot_dimension_numbers<[1], [0], [0], [1], [0, 0, 1, 1], [], []>, precision = #tpu.contract_precision<fp32>} : vector<6x112xf32>, vector<112x256xf32>, vector<6x256xf32> -> vector<6x256xf32>
    %80 = vector.broadcast %6 : vector<1x256xf32> to vector<6x256xf32>
    %81 = arith.addf %79, %80 : vector<6x256xf32>
    %c1_28 = arith.constant 1 : index
    %c1_29 = arith.constant 1 : index
    %c0_30 = arith.constant 0 : index
    %c0_31 = arith.constant 0 : index
    %82 = vector.load %arg2[%c1_28, %c1_29, %c0_30, %c0_31] : memref<2x2x6x256xf32, #tpu.memory_space<vmem>>, vector<1x1x6x256xf32>
    %83 = vector.shape_cast %82 : vector<1x1x6x256xf32> to vector<6x256xf32>
    %84 = vector.shape_cast %81 : vector<6x256xf32> to vector<1x1x6x256xf32>
    tpu.vector_store %arg2[%c1_28, %c1_29, %c0_30, %c0_31], %84 {strides = array<i32>} : memref<2x2x6x256xf32, #tpu.memory_space<vmem>>, vector<1x1x6x256xf32>,
    return
  }
}

</mosaic_0001>

<bundles_post_ra>
// kernel: decode_cnn_forward.1
= control target key start
LH: loop header
LB: loop body
LE: loop exit
PB: predicated region body
PF: predicated region fallthrough
CT: control target
= control target key end

     0   :  { %7 = vsyncpa [#allocation3], 0  ;;  %s7682_s0 = inlined_call_operand.hbm [shape: f32[2,8], index: 0, kind: input, shape index: {}]   ;;  %s7683_s1 = inlined_call_operand.hbm [shape: f32[192,256], index: 1, kind: input, shape index: {}]   ;;  %s7684_s2 = inlined_call_operand.vmem [shape: f32[2,2,6,256], index: 2, kind: output, shape index: {}]  }
   0x1   :  { %8 = vsyncpa [#allocation5], 0  ;;  %s6482_s9 = smov [#allocation2]   ;;  %s6483_s11 = smov [#allocation4]  }
   0x2   :  { %s15_s10 = sshll.u32 %s6482_s9, 4  ;;  %s24_s12 = sshll.u32 %s6483_s11, 4  ;;  %s16_s10 = int_to_ptr.vmem [resolvable:$true] %s15_s10  ;;  %s6514_s12 = int_to_ptr.vmem [resolvable:$true] %s24_s12 }
   0x3   :  { %s6434_s15 = scalar_lea.hbm %s7682_s0, 32 }
   0x4   :  { %p6435_p0 = scmp.ne.s32.totalorder %s7682_s0, %s6434_s15  ;;  %p6438_p1 = scmp.lt.u32.totalorder %s6434_s15, %s7682_s0 }
   0x6   :  { %p6440_p2 = pnand %p6438_p1, %p6435_p0 }
   0x8   :  { %6443 = shalt.err (!%p6440_p2)
}
   0x9   :  { %s6444_s20 = scalar_lea.vmem %s16_s10, 32  ;;  %p6449_p4 = scmp.lt.s32.totalorder %s16_s10, %s16_s10 }
   0xa   :  { %p6445_p3 = scmp.ne.s32.totalorder %s16_s10, %s6444_s20  ;;  %p6450_p5 = scmp.lt.s32.totalorder %s6444_s20, %s6444_s20 }
   0xc   :  { %p6451_p6 = por %p6450_p5, %p6449_p4 }
   0xe   :  { %p6452_p7 = pnand %p6451_p6, %p6445_p3 }
  0x10   :  { %6455 = shalt.err (!%p6452_p7)
}
  0x11   :  { %18 = dma.hbm_to_vmem [thread:$0]  %s7682_s0, 32, %s16_s10, [#allocation3]  }
  0x12   :  { %s6456_s25 = scalar_lea.hbm %s7683_s1, 6144 }
  0x13   :  { %p6457_p8 = scmp.ne.s32.totalorder %s7683_s1, %s6456_s25  ;;  %p6460_p9 = scmp.lt.u32.totalorder %s6456_s25, %s7683_s1 }
  0x15   :  { %p6462_p10 = pnand %p6460_p9, %p6457_p8 }
  0x17   :  { %6465 = shalt.err (!%p6462_p10)
}
  0x18   :  { %s6466_s30 = scalar_lea.vmem %s6514_s12, 6144  ;;  %p6471_p12 = scmp.lt.s32.totalorder %s6514_s12, %s6514_s12 }
  0x19   :  { %p6467_p11 = scmp.ne.s32.totalorder %s6514_s12, %s6466_s30  ;;  %p6472_p13 = scmp.lt.s32.totalorder %s6466_s30, %s6466_s30 }
  0x1b   :  { %p6473_p0 = por %p6472_p13, %p6471_p12 }
  0x1d   :  { %p6474_p1 = pnand %p6473_p0, %p6467_p11 }
  0x1f   :  { %6477 = shalt.err (!%p6474_p1)
}
  0x20   :  { %s6484_s0 = smov 256   ;;  %s6485_s3 = smov 16  }
  0x21   :  { %30 = dma.hbm_to_vmem [thread:$0]  %s7683_s1, 6144, %s6514_s12, [#allocation5], %s6484_s0, %s6484_s0, %s6485_s3  }
  0x22   :  { %6478 = dma.done.wait [#allocation3], 32  }
  0x23   :  { %6479 = vsyncadd [#allocation3], 4294967264 }
  0x24   :  { %6480 = dma.done.wait [#allocation5], 6144  }
  0x25   :  { %6481 = vsyncadd [#allocation5], 4294961152  ;;  %v7687_v0 = vmov 0.0   ;;  %vm6487_vm0 = vmmov 0   ;;  %vm77_vm1 = vcmask 64512   ;;  %v37_v1 = vld [vmem:[#allocation4] sm:$0xff]  ;;  %v1021_v63 = vlaneseq }
  0x26   :  { %5419 = vmatprep.subr.mxu0 %v7687_v0  ;;  %5421 = vmatprep.mubr.msk.f32.mxu0 %vm6487_vm0, %v7687_v0  ;;  %v76_v2 = vld [vmem:[#allocation2] sm:$0x3]  ;;  %v82_v3 = vand.u32 4294901760, %v37_v1  ;;  %v39_v14 = vld [vmem:[#allocation4 + $0x20] sm:$0xff]  ;;  %v40_v15 = vld [vmem:[#allocation4 + $0x30] sm:$0xff]  ;;  %v7685_v21 = vmov 0.0|0.0  }
  0x27   :  { %5404 = vmatprep.subr.mxu1 %v7687_v0  ;;  %5406 = vmatprep.mubr.msk.f32.mxu1 %vm6487_vm0, %v7687_v0  ;;  %v79_v4 = vsel %vm77_vm1, %v76_v2, 0  ;;  %v533_v16 = vand.u32 4294901760, %v39_v14  ;;  %v536_v17 = vand.u32 4294901760, %v40_v15  ;;  %v41_v22 = vld [vmem:[#allocation4 + $0x40] sm:$0xff]  ;;  %v42_v23 = vld [vmem:[#allocation4 + $0x50] sm:$0xff]  ;;  %vm528_vm2 = vcmask 261120  }
  0x28   :  { %v147_v5 = vand.u32 4294901760, %v79_v4  ;;  %v159_v6 = vsub.f32 %v37_v1, %v82_v3  ;;  %5420 = vmatpush3.msra.mxu0 %v82_v3  ;;  %5405 = vmatpush3.msra.mxu1 %v82_v3  ;;  %v539_v24 = vand.u32 4294901760, %v41_v22  ;;  %v542_v25 = vand.u32 4294901760, %v42_v23  ;;  %v38_v49 = vld [vmem:[#allocation4 + $0x10] ss:$0 sm:$0xff]  ;;  %s6490_s1 = smov 104  }
  0x29   :  { %5409 = vmatprep.subr.mxu1 %v7687_v0  ;;  %5424 = vmatprep.subr.mxu0 %v7687_v0  ;;  %v6568_v18 = vpack.c.bf16 %v536_v17, %v533_v16  ;;  %v613_v19 = vsub.f32 %v39_v14, %v533_v16  ;;  %v620_v20 = vsub.f32 %v40_v15, %v536_v17  ;;  %v6489_v61 = vmov 1966171168   ;;  %s6491_s6 = smov 120   ;;  %s6492_s7 = smov 96  }
  0x2a   :  { %v148_v7 = vsub.f32 %v79_v4, %v147_v5  ;;  %v160_v8 = vand.u32 4294901760, %v159_v6  ;;  %v6574_v28 = vpack.c.bf16 %v542_v25, %v539_v24  ;;  %v627_v29 = vsub.f32 %v41_v22, %v539_v24  ;;  %s6493_s8 = smov 112   ;;  %s6494_s9 = smov 80   ;;  %v44_v24 = vld [vmem:[#allocation4 + $0x70] sm:$0xff] }
  0x2b   :  { %v614_v26 = vand.u32 4294901760, %v613_v19  ;;  %v621_v27 = vand.u32 4294901760, %v620_v20  ;;  %v634_v30 = vsub.f32 %v42_v23, %v542_v25  ;;  %v5597_v43 = vpack.c.bf16 %v620_v20, %v613_v19  ;;  %s6495_s10 = smov 88   ;;  %s6496_s11 = smov 72   ;;  %v45_v25 = vld [vmem:[#allocation4 + $0x80] sm:$0xff] }
  0x2c   :  { %v149_v9 = vand.u32 4294901760, %v148_v7  ;;  %v161_v10 = vsub.f32 %v159_v6, %v160_v8  ;;  %v628_v34 = vand.u32 4294901760, %v627_v29  ;;  %v1019_v62 = vunpack.c.l.s4 %v6489_v61  ;;  %s6497_s12 = smov 8   ;;  %s6498_s13 = smov 56  }
  0x2d   :  { %v615_v31 = vsub.f32 %v613_v19, %v614_v26  ;;  %v622_v32 = vsub.f32 %v620_v20, %v621_v27  ;;  %v635_v35 = vand.u32 4294901760, %v634_v30  ;;  %v5600_v44 = vpack.c.bf16 %v634_v30, %v627_v29 }
  0x2e   :  { %5422 = vmatmul.mubr.f32.vlgmr.msra.gmra.mrb[0].mxu0 %v149_v9  ;;  %v150_v11 = vsub.f32 %v148_v7, %v149_v9  ;;  %v162_v12 = vand.u32 4294901760, %v161_v10  ;;  %v629_v37 = vsub.f32 %v627_v29, %v628_v34  ;;  %v5609_v45 = vpack.c.bf16 %v621_v27, %v614_v26 }
  0x2f   :  { %5425 = vmatpush3.msra.mxu0 %v160_v8  ;;  %5426 = vmatprep.mubr.msk.f32.mxu0 %vm6487_vm0, %v7687_v0  ;;  %v616_v33 = vand.u32 4294901760, %v615_v31  ;;  %v623_v36 = vand.u32 4294901760, %v622_v32  ;;  %v636_v38 = vsub.f32 %v634_v30, %v635_v35  ;;  %v5612_v46 = vpack.c.bf16 %v635_v35, %v628_v34 }
  0x30   :  { %v151_v13 = vand.u32 4294901760, %v150_v11  ;;  %5429 = vmatprep.subr.mxu0 %v7687_v0  ;;  %v630_v40 = vand.u32 4294901760, %v629_v37  ;;  %v1020_v1 = vunpack.c.0.s8 %v1019_v62  ;;  %v6602_v2 = vshrl.u32 %v1021_v63, 7  ;;  %v6651_v63 = vld [vmem:[#allocation4 + $0x98] sm:$0xff] }
  0x31   :  { %v5591_v39 = vpack.c.bf16 %v623_v36, %v616_v33  ;;  %v637_v41 = vand.u32 4294901760, %v636_v38  ;;  %vm1092_vm3 = vcmask 1040384   ;;  %vm1095_vm4 = vcmask 1041408  }
  0x32   :  { %5407 = vmatmul.mubr.f32.vlgmr.msra.gmra.mrb[0].mxu1 %v151_v13  ;;  %7769 = vst [vmem:[#allocation8_spill] sm:$0xff] %v6602_v2  ;;  %v1023_v4 = vsub.s32 %v1020_v1, %v6602_v2  ;;  %v6606_v9 = vsub.s32 0, %v6602_v2  ;;  %vm1098_vm5 = vcmask 1042432   ;;  %vm1101_vm6 = vcmask 1043456   ;;  %v6653_v1 = vld [vmem:[#allocation4 + $0xa8] sm:$0xff] }
  0x33   :  { %5410 = vmatpush3.msra.mxu1 %v162_v12  ;;  %5411 = vmatprep.mubr.msk.f32.mxu1 %vm6487_vm0, %v7687_v0  ;;  %v5594_v42 = vpack.c.bf16 %v637_v41, %v630_v40  ;;  %vm1104_vm7 = vcmask 1044480   ;;  %v1124_v27 = vand.u32 4294901760, %v44_v24  ;;  %vm1107_vm8 = vcmask 1045504  }
  0x34   :  { %5414 = vmatprep.subr.mxu1 %v7687_v0  ;;  %7770 = vst [vmem:[#allocation9_spill] sm:$0xff] %v6606_v9  ;;  %vm1110_vm9 = vcmask 1046528   ;;  %vm1119_vm10 = vcmask 130048   ;;  %vm1593_vm11 = vcmask 916480   ;;  %vm2409_vm12 = vcmask 457728  }
  0x35   :  { %v1202_v32 = vsub.f32 %v44_v24, %v1124_v27  ;;  %v6683_v24 = vld [vmem:[#allocation4 + $0xe8] sm:$0xff] }
  0x36   :  { %5427 = vmatmul.mubr.f32.vlgmr.msra.gmra.mrb[0].mxu0 %v147_v5 }
  0x37   :  { %5430 = vmatpush3.msra.mxu0 %v82_v3  ;;  %5431 = vmatprep.mubr.msk.f32.mxu0 %vm6487_vm0, %v7687_v0  ;;  %v43_v3 = vld [vmem:[#allocation4 + $0x60] ss:$0 sm:$0xff]  ;;  %v1203_v36 = vand.u32 4294901760, %v1202_v32 }
  0x38   :  { %5620 = vmatprep.subr.bf16.mxu0 %v7685_v21 }
  0x39   :  { %v1204_v40 = vsub.f32 %v1202_v32, %v1203_v36 }
  0x3a   :  { %5412 = vmatmul.mubr.f32.vlgmr.msra.gmra.mrb[0].mxu1 %v147_v5 }
  0x3b   :  { %5415 = vmatpush3.msra.mxu1 %v159_v6  ;;  %5416 = vmatprep.mubr.msk.f32.mxu1 %vm6487_vm0, %v7687_v0 }
  0x3c   :  { %5584 = vmatprep.subr.bf16.mxu1 %v7685_v21 }
  0x3e   :  { %5432 = vmatmul.mubr.f32.vlgmr.msra.gmra.mrb[0].mxu0 %v147_v5 }
  0x3f   :  { %5504 = vmatprep.mubr.msk.f32.mxu0 %vm6487_vm0, %v7687_v0 }
  0x42   :  { %5417 = vmatmul.mubr.f32.vlgmr.msra.gmra.mrb[0].mxu1 %v148_v7 }
  0x43   :  { %5442 = vmatprep.mubr.msk.f32.mxu1 %vm6487_vm0, %v7687_v0  ;;  %5586 = vmatpush3.bf16.msra.mxu1 %v6568_v18 }
  0x44   :  { %5587 = vmatprep.subr.bf16.mxu1 %v7685_v21 }
  0x47   :  { %5589 = vmatpush3.bf16.msra.mxu1 %v6574_v28 }
  0x48   :  { %5590 = vmatprep.subr.bf16.mxu1 %v7685_v21 }
 0x111   :  { %v523_v47 = vpop.f32.mrb[0].mxu0 }
 0x112   :  { %v5433_v48 = vpop.f32.mrb[1].mxu0 }
 0x115   :  { %v303_v50 = vpop.f32.mrb[0].mxu1 }
 0x116   :  { %v6328_v51 = vadd.f32 %v303_v50, %v38_v49  ;;  %v5418_v52 = vpop.f32.mrb[1].mxu1 }
 0x118   :  { %v6329_v53 = vadd.f32 %v6328_v51, %v523_v47 }
 0x11a   :  { %v527_v54 = vmax.f32 %v6329_v53, 0.0 }
 0x11c   :  { %v530_v55 = vsel %vm528_vm2, %v527_v54, 0 }
 0x11d   :  { %v601_v56 = vand.u32 4294901760, %v530_v55 }
 0x11f   :  { %v602_v57 = vsub.f32 %v530_v55, %v601_v56 }
 0x121   :  { %v603_v58 = vand.u32 4294901760, %v602_v57 }
 0x123   :  { %v604_v59 = vsub.f32 %v602_v57, %v603_v58 }
 0x125   :  { %v605_v60 = vand.u32 4294901760, %v604_v59 }
 0x127   :  { %5443 = vmatmul.mubr.f32.vlgmr.msra.gmra.mrb[2].mxu1 %v605_v60 }
 0x128   :  { %5592 = vmatpush3.bf16.msra.mxu1 %v5591_v39  ;;  %5453 = vmatprep.mubr.msk.f32.mxu1 %vm6487_vm0, %v7687_v0 }
 0x129   :  { %5593 = vmatprep.subr.bf16.mxu1 %v7685_v21 }
 0x12c   :  { %5595 = vmatpush3.bf16.msra.mxu1 %v5594_v42  ;;  %v1205_v42 = vand.u32 4294901760, %v1204_v40 }
 0x12d   :  { %5596 = vmatprep.subr.bf16.mxu1 %v7685_v21 }
 0x12f   :  { %5454 = vmatmul.mubr.f32.vlgmr.msra.gmra.mrb[2].mxu1 %v601_v56 }
 0x130   :  { %5598 = vmatpush3.bf16.msra.mxu1 %v5597_v43  ;;  %5464 = vmatprep.mubr.msk.f32.mxu1 %vm6487_vm0, %v7687_v0 }
 0x131   :  { %5599 = vmatprep.subr.bf16.mxu1 %v7685_v21 }
 0x134   :  { %5601 = vmatpush3.bf16.msra.mxu1 %v5600_v44 }
 0x135   :  { %5602 = vmatprep.subr.bf16.mxu1 %v7685_v21 }
 0x137   :  { %5465 = vmatmul.mubr.f32.vlgmr.msra.gmra.mrb[2].mxu1 %v602_v57 }
 0x138   :  { %5604 = vmatpush3.bf16.msra.mxu1 %v6568_v18  ;;  %5475 = vmatprep.mubr.msk.f32.mxu1 %vm6487_vm0, %v7687_v0 }
 0x139   :  { %5605 = vmatprep.subr.bf16.mxu1 %v7685_v21 }
 0x13c   :  { %5607 = vmatpush3.bf16.msra.mxu1 %v6574_v28 }
 0x13d   :  { %5608 = vmatprep.subr.bf16.mxu1 %v7685_v21 }
 0x13f   :  { %5476 = vmatmul.mubr.f32.vlgmr.msra.gmra.mrb[2].mxu1 %v603_v58 }
 0x140   :  { %5610 = vmatpush3.bf16.msra.mxu1 %v5609_v45  ;;  %5486 = vmatprep.mubr.msk.f32.mxu1 %vm6487_vm0, %v7687_v0 }
 0x141   :  { %5611 = vmatprep.subr.bf16.mxu1 %v7685_v21 }
 0x144   :  { %5613 = vmatpush3.bf16.msra.mxu1 %v5612_v46 }
 0x145   :  { %5614 = vmatprep.subr.bf16.mxu1 %v7685_v21 }
 0x147   :  { %5487 = vmatmul.mubr.f32.vlgmr.msra.gmra.mrb[2].mxu1 %v601_v56 }
 0x148   :  { %5616 = vmatpush3.bf16.msra.mxu1 %v6568_v18  ;;  %5497 = vmatprep.mubr.msk.f32.mxu1 %vm6487_vm0, %v7687_v0 }
 0x149   :  { %5617 = vmatprep.subr.bf16.mxu1 %v7685_v21 }
 0x14c   :  { %5619 = vmatpush3.bf16.msra.mxu1 %v6574_v28  ;;  %v1127_v28 = vand.u32 4294901760, %v45_v25 }
 0x14e   :  { %v6620_v31 = vpack.c.bf16 %v1127_v28, %v1124_v27  ;;  %v1209_v33 = vsub.f32 %v45_v25, %v1127_v28 }
 0x14f   :  { %5498 = vmatmul.mubr.f32.vlgmr.msra.gmra.mrb[2].mxu1 %v601_v56 }
 0x150   :  { %2506 = vmatprep.mubr.f32.mxu1 %v7687_v0  ;;  %7771 = vst [vmem:[#allocation10_spill] sm:$0xff] %v6620_v31  ;;  %5622 = vmatpush3.bf16.msra.mxu0 %v6620_v31  ;;  %v1210_v37 = vand.u32 4294901760, %v1209_v33  ;;  %v6630_v45 = vpack.c.bf16 %v1209_v33, %v1202_v32 }
 0x151   :  { %5623 = vmatprep.subr.bf16.mxu0 %v7685_v21 }
 0x152   :  { %v1211_v41 = vsub.f32 %v1209_v33, %v1210_v37  ;;  %7773 = vst [vmem:[#allocation12_spill] sm:$0xff] %v6630_v45  ;;  %v6634_v46 = vpack.c.bf16 %v1210_v37, %v1203_v36  ;;  %v7697_v33 = vand.u32 4294901760, %v6683_v24  ;;  %v6714_v36 = vld [vmem:[#allocation4 + $0xf8] sm:$0xff]  ;;  %v6716_v37 = vld [vmem:[#allocation4 + $0x108] sm:$0xff] }
 0x154   :  { %v1212_v43 = vand.u32 4294901760, %v1211_v41  ;;  %7774 = vst [vmem:[#allocation13_spill] sm:$0xff] %v6634_v46 }
 0x156   :  { %v6627_v44 = vpack.c.bf16 %v1212_v43, %v1205_v42  ;;  %v7694_v42 = vand.u32 4294901760, %v6714_v36  ;;  %v7693_v43 = vand.u32 4294901760, %v6716_v37 }
 0x158   :  { %7772 = vst [vmem:[#allocation11_spill] sm:$0xff] %v6627_v44 }
 0x222   :  { %v1013_v5 = vpop.f32.mrb[2].mxu1 }
 0x223   :  { %v6330_v6 = vadd.f32 %v1013_v5, %v43_v3  ;;  %v5499_v7 = vpop.f32.mrb[3].mxu1  ;;  %v6655_v3 = vld [vmem:[#allocation4 + $0x90] sm:$0xff]  ;;  %v1597_v5 = vand.u32 4294901760, %v6651_v63 }
 0x224   :  { %v6659_v7 = vld [vmem:[#allocation4 + $0xa0] sm:$0xff] }
 0x225   :  { %v1024_v8 = vrot.slane %v6330_v6, %v1023_v4  ;;  %v1601_v6 = vand.u32 4294901760, %v6653_v1 }
 0x227   :  { %v1032_v10 = vrot.slane %v1024_v8, %v1023_v4  ;;  %v1025_v12 = vcombine.high %v1024_v8, %v1024_v8  ;;  %v7704_v8 = vand.u32 4294901760, %v6655_v3 }
 0x229   :  { %v1045_v11 = vrot.slane %v1032_v10, %v6606_v9  ;;  %v1039_v13 = vrot.slane %v1025_v12, %v1023_v4 }
 0x22b   :  { %1062 = vrot.lane.b32.xlu1 %v1045_v11, %s6490_s1  ;;  %1050 = vrot.lane.b32.xlu0 %v1045_v11, %s6491_s6  ;;  %v1049_v14 = vrot.slane %v1039_v13, %v6606_v9 }
 0x22f   :  { %1068 = vrot.lane.b32.xlu1 %v1045_v11, %s6492_s7  ;;  %1056 = vrot.lane.b32.xlu0 %v1045_v11, %s6493_s8 }
 0x233   :  { %1080 = vrot.lane.b32.xlu1 %v1045_v11, %s6494_s9  ;;  %1074 = vrot.lane.b32.xlu0 %v1045_v11, %s6495_s10 }
 0x237   :  { %1086 = vrot.lane.b32.xlu0 %v1045_v11, %s6496_s11 }
 0x23b   :  { %1052 = vrot.lane.b32.xlu0 %v1049_v14, %s6491_s6 }
 0x23f   :  { %1064 = vrot.lane.b32.xlu0 %v1049_v14, %s6490_s1 }
 0x243   :  { %1076 = vrot.lane.b32.xlu0 %v1049_v14, %s6495_s10 }
 0x247   :  { %1088 = vrot.lane.b32.xlu0 %v1049_v14, %s6496_s11 }
 0x29d   :  { %v1063_v15 = vpop.permute.xlu1 %1062  ;;  %v1051_v16 = vpop.permute.xlu0 %1050 }
 0x29e   :  { %v1093_v17 = vsel %vm1092_vm3, %v1032_v10, %v1051_v16  ;;  %v6662_v10 = vld [vmem:[#allocation4 + $0xb8] sm:$0xff]  ;;  %v6669_v16 = vld [vmem:[#allocation4 + $0xb0] sm:$0xff] }
 0x29f   :  { %v7700_v27 = vand.u32 4294901760, %v6669_v16 }
 0x2a1   :  { %v1069_v18 = vpop.permute.xlu1 %1068  ;;  %v1057_v19 = vpop.permute.xlu0 %1056 }
 0x2a2   :  { %v1096_v20 = vsel %vm1095_vm4, %v1093_v17, %v1057_v19  ;;  %v6671_v17 = vld [vmem:[#allocation4 + $0xc0] sm:$0xff] }
 0x2a3   :  { %v1099_v22 = vsel %vm1098_vm5, %v1096_v20, %v1063_v15  ;;  %v7702_v15 = vand.u32 4294901760, %v6662_v10  ;;  %v6678_v20 = vpack.c.bf16 %v1601_v6, %v1597_v5  ;;  %v7699_v28 = vand.u32 4294901760, %v6671_v17 }
 0x2a4   :  { %v1102_v23 = vsel %vm1101_vm6, %v1099_v22, %v1069_v18 }
 0x2a5   :  { %v1075_v26 = vpop.permute.xlu0 %1074  ;;  %v1081_v29 = vpop.permute.xlu1 %1080  ;;  %5807 = vmatprep.subr.bf16.mxu1 %v6678_v20 }
 0x2a6   :  { %v1105_v30 = vsel %vm1104_vm7, %v1102_v23, %v1075_v26  ;;  %v6681_v23 = vld [vmem:[#allocation4 + $0xd8] sm:$0xff] }
 0x2a7   :  { %v1108_v34 = vsel %vm1107_vm8, %v1105_v30, %v1081_v29  ;;  %v7698_v32 = vand.u32 4294901760, %v6681_v23 }
 0x2a9   :  { %v1087_v35 = vpop.permute.xlu0 %1086  ;;  %v6733_v41 = vpack.c.bf16 %v7697_v33, %v7698_v32  ;;  %v70_v32 = vld [vmem:[#allocation4 + $0x150] sm:$0xff] }
 0x2aa   :  { %v1111_v38 = vsel %vm1110_vm9, %v1108_v34, %v1087_v35  ;;  %v6709_v34 = vld [vmem:[#allocation4 + $0xd0] sm:$0xff]  ;;  %v6711_v35 = vld [vmem:[#allocation4 + $0xe0] sm:$0xff] }
 0x2ab   :  { %v1114_v39 = vrot.slane %v1111_v38, 1  ;;  %v7695_v40 = vand.u32 4294901760, %v6711_v35 }
 0x2ad   :  { %1115 = vrot.lane.b32.xlu1 %v1114_v39, %s6497_s12  ;;  %v1053_v47 = vpop.permute.xlu0 %1052  ;;  %v7696_v39 = vand.u32 4294901760, %v6709_v34 }
 0x2ae   :  { %v1094_v53 = vsel %vm1092_vm3, %v1039_v13, %v1053_v47  ;;  %v7703_v13 = vand.u32 4294901760, %v6659_v7  ;;  %v6737_v47 = vld [vmem:[#allocation4 + $0xf0] sm:$0xff] }
 0x2b0   :  { %v6695_v26 = vpack.c.bf16 %v7703_v13, %v7704_v8 }
 0x2b1   :  { %1058 = vrot.lane.b32.xlu1 %v1049_v14, %s6493_s8  ;;  %v1065_v49 = vpop.permute.xlu0 %1064 }
 0x2b2   :  { %5809 = vmatpush1.bf16.msra.mxu1 %v6695_v26 }
 0x2b5   :  { %1070 = vrot.lane.b32.xlu1 %v1049_v14, %s6492_s7  ;;  %v1077_v57 = vpop.permute.xlu0 %1076 }
 0x2b9   :  { %1082 = vrot.lane.b32.xlu1 %v1049_v14, %s6494_s9  ;;  %v6666_v14 = vld [vmem:[#allocation4 + $0xc8] sm:$0xff]  ;;  %v1089_v18 = vpop.permute.xlu0 %1088 }
 0x2ba   :  { %v7701_v22 = vand.u32 4294901760, %v6666_v14 }
 0x2bc   :  { %v6705_v30 = vpack.c.bf16 %v7701_v22, %v7702_v15 }
 0x2be   :  { %5811 = vmatprep.subr.bf16.mxu1 %v6705_v30 }
 0x31f   :  { %v1116_v48 = vpop.permute.xlu1 %1115 }
 0x320   :  { %v1118_v50 = vsel %vm77_vm1, %v1111_v38, %v1116_v48  ;;  %v6725_v38 = vpack.c.bf16 %v7699_v28, %v7700_v27  ;;  %v6739_v48 = vld [vmem:[#allocation4 + $0x100] sm:$0xff] }
 0x321   :  { %v1121_v51 = vsel %vm1119_vm10, %v1118_v50, 0  ;;  %v6743_v50 = vld [vmem:[#allocation4 + $0x128] sm:$0xff]  ;;  %v72_v28 = vld [vmem:[#allocation4 + $0x160] sm:$0xff] }
 0x322   :  { %v6638_v52 = vand.u32 4294901760, %v1121_v51  ;;  %5813 = vmatpush1.bf16.msra.mxu1 %v6725_v38 }
 0x323   :  { %v1059_v54 = vpop.permute.xlu1 %1058  ;;  %5815 = vmatprep.subr.bf16.mxu1 %v6733_v41 }
 0x324   :  { %v6642_v55 = vsub.f32 %v1121_v51, %v6638_v52  ;;  %v1097_v56 = vsel %vm1095_vm4, %v1094_v53, %v1059_v54  ;;  %v6755_v51 = vpack.c.bf16 %v7695_v40, %v7696_v39  ;;  %v7692_v53 = vand.u32 4294901760, %v6737_v47  ;;  %v73_v40 = vld [vmem:[#allocation4 + $0x168] sm:$0xff] }
 0x325   :  { %v1100_v60 = vsel %vm1098_vm5, %v1097_v56, %v1065_v49  ;;  %v6741_v49 = vld [vmem:[#allocation4 + $0x118] sm:$0xff]  ;;  %v7691_v54 = vand.u32 4294901760, %v6739_v48  ;;  %v6764_v56 = vpack.c.bf16 %v7693_v43, %v7694_v42  ;;  %v1649_v33 = vand.u32 4294901760, %v73_v40 }
 0x326   :  { %v1192_v58 = vand.u32 4294901760, %v6642_v55  ;;  %5817 = vmatpush1.bf16.msra.mxu1 %v6755_v51  ;;  %v71_v42 = vld [vmem:[#allocation4 + $0x158] sm:$0xff] }
 0x327   :  { %v1071_v59 = vpop.permute.xlu1 %1070  ;;  %5819 = vmatprep.subr.bf16.mxu1 %v6764_v56  ;;  %v1645_v39 = vand.u32 4294901760, %v71_v42 }
 0x328   :  { %v1103_v61 = vsel %vm1101_vm6, %v1100_v60, %v1071_v59  ;;  %v1193_v62 = vsub.f32 %v6642_v55, %v1192_v58  ;;  %v7689_v59 = vand.u32 4294901760, %v6743_v50  ;;  %v6774_v60 = vpack.c.bf16 %v7691_v54, %v7692_v53 }
 0x329   :  { %v1106_v12 = vsel %vm1104_vm7, %v1103_v61, %v1077_v57  ;;  %v7690_v57 = vand.u32 4294901760, %v6741_v49  ;;  %v6819_v54 = vsub.f32 %v6651_v63, %v1597_v5  ;;  %v6824_v53 = vsub.f32 %v6653_v1, %v1601_v6 }
 0x32a   :  { %v1194_v4 = vand.u32 4294901760, %v1193_v62  ;;  %5821 = vmatpush1.bf16.msra.mxu1 %v6774_v60  ;;  %v1647_v1 = vand.u32 4294901760, %v70_v32  ;;  %v1651_v5 = vand.u32 4294901760, %v72_v28  ;;  %v6834_v6 = vpack.c.bf16 %v1649_v33, %v1645_v39 }
 0x32b   :  { %v1083_v11 = vpop.permute.xlu1 %1082  ;;  %v6780_v61 = vpack.c.bf16 %v7689_v59, %v7690_v57  ;;  %7776 = vst [vmem:[#allocation15_spill] sm:$0xff] %v6824_v53  ;;  %v7707_v27 = vand.u32 4294901760, %v6819_v54  ;;  %v7708_v63 = vand.u32 4294901760, %v6824_v53 }
 0x32c   :  { %v1109_v19 = vsel %vm1107_vm8, %v1106_v12, %v1083_v11  ;;  %5505 = vmatmul.mubr.f32.vlgmr.msra.gmra.mrb[2].mxu0 %v1194_v4  ;;  %v67_v11 = vld [vmem:[#allocation4 + $0x138] sm:$0xff]  ;;  %v69_v12 = vld [vmem:[#allocation4 + $0x148] sm:$0xff]  ;;  %v6842_v13 = vpack.c.bf16 %v1651_v5, %v1647_v1 }
 0x32d   :  { %v6686_v25 = vsel %vm1110_vm9, %v1109_v19, %v1089_v18  ;;  %5625 = vmatpush3.bf16.msra.mxu0 %v6627_v44  ;;  %5511 = vmatprep.mubr.msk.f32.mxu0 %vm6487_vm0, %v7687_v0  ;;  %v1637_v18 = vand.u32 4294901760, %v67_v11  ;;  %v1641_v19 = vand.u32 4294901760, %v69_v12  ;;  %v1704_v22 = vsub.f32 %v6819_v54, %v7707_v27 }
 0x32e   :  { %7775 = vst [vmem:[#allocation14_spill] sm:$0xff] %v6686_v25  ;;  %v3221_v29 = vrot.slane %v6686_v25, 1  ;;  %5626 = vmatprep.subr.bf16.mxu0 %v7685_v21  ;;  %5823 = vmatprep.subr.bf16.mxu1 %v6780_v61  ;;  %v1716_v15 = vsub.f32 %v6824_v53, %v7708_v63  ;;  %7777 = vst [vmem:[#allocation16_spill] sm:$0xff] %v6842_v13 }
 0x32f   :  { %v6814_v57 = vpack.c.bf16 %v1641_v19, %v1637_v18  ;;  %v1705_v8 = vand.u32 4294901760, %v1704_v22 }
 0x330   :  { %3222 = vrot.lane.b32.xlu1 %v3221_v29, %s6497_s12  ;;  %v66_v29 = vld [vmem:[#allocation4 + $0x130] sm:$0xff]  ;;  %v1717_v9 = vand.u32 4294901760, %v1716_v15 }
 0x332   :  { %v6848_v2 = vpack.c.bf16 %v1717_v9, %v1705_v8  ;;  %v6864_v8 = vsub.f32 %v69_v12, %v1641_v19  ;;  %v6879_v19 = vsub.f32 %v71_v42, %v1645_v39  ;;  %v6897_v42 = vsub.f32 %v72_v28, %v1651_v5 }
 0x334   :  { %5512 = vmatmul.mubr.f32.vlgmr.msra.gmra.mrb[2].mxu0 %v6638_v52  ;;  %7778 = vst [vmem:[#allocation17_spill] sm:$0xff] %v6848_v2  ;;  %7782 = vst [vmem:[#allocation21_spill] sm:$0xff] %v6864_v8  ;;  %v7717_v39 = vand.u32 4294901760, %v6879_v19 }
 0x335   :  { %5628 = vmatpush3.bf16.msra.mxu0 %v6630_v45  ;;  %5518 = vmatprep.mubr.msk.f32.mxu0 %vm6487_vm0, %v7687_v0  ;;  %7785 = vst [vmem:[#allocation24_spill] sm:$0xff] %v6879_v19  ;;  %7788 = vst [vmem:[#allocation27_spill] sm:$0xff] %v6897_v42 }
 0x336   :  { %5629 = vmatprep.subr.bf16.mxu0 %v7685_v21 }
 0x33c   :  { %5519 = vmatmul.mubr.f32.vlgmr.msra.gmra.mrb[2].mxu0 %v6642_v55  ;;  %v62_v55 = vld [vmem:[#allocation4 + $0x110] sm:$0xff] }
 0x33d   :  { %5631 = vmatpush3.bf16.msra.mxu0 %v6620_v31  ;;  %5525 = vmatprep.mubr.msk.f32.mxu0 %vm6487_vm0, %v7687_v0 }
 0x33e   :  { %5632 = vmatprep.subr.bf16.mxu0 %v7685_v21 }
 0x344   :  { %5526 = vmatmul.mubr.f32.vlgmr.msra.gmra.mrb[2].mxu0 %v1192_v58  ;;  %v1631_v58 = vand.u32 4294901760, %v62_v55 }
 0x345   :  { %5634 = vmatpush3.bf16.msra.mxu0 %v6634_v46  ;;  %5532 = vmatprep.mubr.msk.f32.mxu0 %vm6487_vm0, %v7687_v0  ;;  %v6856_v46 = vsub.f32 %v67_v11, %v1637_v18  ;;  %v7714_v11 = vand.u32 4294901760, %v6864_v8 }
 0x346   :  { %5635 = vmatprep.subr.bf16.mxu0 %v7685_v21  ;;  %v68_v21 = vld [vmem:[#allocation4 + $0x140] sm:$0xff]  ;;  %v6852_v27 = vsub.f32 %v62_v55, %v1631_v58 }
 0x347   :  { %v1643_v59 = vand.u32 4294901760, %v68_v21  ;;  %7781 = vst [vmem:[#allocation20_spill] sm:$0xff] %v6856_v46  ;;  %v7713_v45 = vand.u32 4294901760, %v6856_v46 }
 0x348   :  { %7779 = vst [vmem:[#allocation18_spill] sm:$0xff] %v6852_v27  ;;  %v7712_v15 = vand.u32 4294901760, %v6852_v27 }
 0x34a   :  { %v1806_v9 = vsub.f32 %v6852_v27, %v7712_v15 }
 0x34c   :  { %5533 = vmatmul.mubr.f32.vlgmr.msra.gmra.mrb[2].mxu0 %v6638_v52 }
 0x34d   :  { %5637 = vmatpush3.bf16.msra.mxu0 %v6620_v31  ;;  %5539 = vmatprep.mubr.msk.f32.mxu0 %vm6487_vm0, %v7687_v0 }
 0x34e   :  { %5639 = vmatprep.subr.bf16.mxu0 %v6678_v20 }
 0x354   :  { %5540 = vmatmul.mubr.f32.vlgmr.msra.gmra.mrb[2].mxu0 %v6638_v52  ;;  %v64_v52 = vld [vmem:[#allocation4 + $0x120] sm:$0xff] }
 0x355   :  { %5641 = vmatpush1.bf16.msra.mxu0 %v6695_v26  ;;  %1689 = vmatprep.mubr.f32.mxu0 %v7687_v0  ;;  %v1635_v62 = vand.u32 4294901760, %v64_v52  ;;  %v1639_v0 = vand.u32 4294901760, %v66_v29 }
 0x356   :  { %5643 = vmatprep.subr.bf16.mxu0 %v6705_v30 }
 0x357   :  { %v6810_v4 = vpack.c.bf16 %v1635_v62, %v1631_v58  ;;  %v6826_v43 = vpack.c.bf16 %v1643_v59, %v1639_v0  ;;  %v6854_v63 = vsub.f32 %v64_v52, %v1635_v62  ;;  %v6866_v44 = vsub.f32 %v66_v29, %v1639_v0 }
 0x358   :  { %v1824_v52 = vsub.f32 %v6856_v46, %v7713_v45  ;;  %v6874_v58 = vsub.f32 %v68_v21, %v1643_v59  ;;  %v1807_v62 = vand.u32 4294901760, %v1806_v9  ;;  %v1836_v29 = vsub.f32 %v6864_v8, %v7714_v11 }
 0x359   :  { %5645 = vmatpush1.bf16.msra.mxu0 %v6725_v38  ;;  %5825 = vmatpush1.bf16.msra.mxu1 %v6810_v4  ;;  %7780 = vst [vmem:[#allocation19_spill] sm:$0xff] %v6854_v63  ;;  %v7715_v22 = vand.u32 4294901760, %v6854_v63  ;;  %7783 = vst [vmem:[#allocation22_spill] sm:$0xff] %v6866_v44  ;;  %v7716_v18 = vand.u32 4294901760, %v6866_v44  ;;  %v6887_v59 = vsub.f32 %v73_v40, %v1649_v33  ;;  %v7719_v40 = vand.u32 4294901760, %v6897_v42 }
 0x35a   :  { %5647 = vmatprep.subr.bf16.mxu0 %v6733_v41  ;;  %5827 = vmatprep.subr.bf16.mxu1 %v6814_v57  ;;  %7784 = vst [vmem:[#allocation23_spill] sm:$0xff] %v6874_v58  ;;  %v1825_v12 = vand.u32 4294901760, %v1824_v52  ;;  %v7721_v0 = vand.u32 4294901760, %v6874_v58  ;;  %v6889_v9 = vsub.f32 %v70_v32, %v1647_v1  ;;  %v1837_v52 = vand.u32 4294901760, %v1836_v29 }
 0x35b   :  { %v1818_v55 = vsub.f32 %v6854_v63, %v7715_v22  ;;  %v1830_v21 = vsub.f32 %v6866_v44, %v7716_v18  ;;  %7786 = vst [vmem:[#allocation25_spill] sm:$0xff] %v6887_v59  ;;  %v7718_v22 = vand.u32 4294901760, %v6887_v59  ;;  %v1848_v32 = vsub.f32 %v6879_v19, %v7717_v39 }
 0x35c   :  { %7787 = vst [vmem:[#allocation26_spill] sm:$0xff] %v6889_v9  ;;  %v7720_v18 = vand.u32 4294901760, %v6889_v9  ;;  %v6905_v1 = vpack.c.bf16 %v1837_v52, %v1825_v12  ;;  %v1866_v29 = vsub.f32 %v6897_v42, %v7719_v40 }
 0x35d   :  { %5649 = vmatpush1.bf16.msra.mxu0 %v6755_v51  ;;  %5829 = vmatpush1.bf16.msra.mxu1 %v6826_v43  ;;  %v1819_v15 = vand.u32 4294901760, %v1818_v55  ;;  %v1842_v55 = vsub.f32 %v6874_v58, %v7721_v0  ;;  %v1831_v11 = vand.u32 4294901760, %v1830_v21  ;;  %v1860_v28 = vsub.f32 %v6887_v59, %v7718_v22 }
 0x35e   :  { %5651 = vmatprep.subr.bf16.mxu0 %v6764_v56  ;;  %5831 = vmatprep.subr.bf16.mxu1 %v6834_v6  ;;  %v1854_v5 = vsub.f32 %v6889_v9, %v7720_v18  ;;  %v1867_v39 = vand.u32 4294901760, %v1866_v29  ;;  %v6924_v22 = vpack.c.bf16 %v6824_v53, %v6819_v54  ;;  %v7795_v29 = vand.u32 4294901760, %v6659_v7 }
 0x35f   :  { %v6891_v45 = vpack.c.bf16 %v1819_v15, %v1807_v62  ;;  %v1843_v33 = vand.u32 4294901760, %v1842_v55  ;;  %v1849_v62 = vand.u32 4294901760, %v1848_v32  ;;  %v1861_v21 = vand.u32 4294901760, %v1860_v28 }
 0x360   :  { %v1855_v55 = vand.u32 4294901760, %v1854_v5  ;;  %v6936_v32 = vpack.c.bf16 %v6874_v58, %v6866_v44  ;;  %v6944_v28 = vpack.c.bf16 %v6897_v42, %v6889_v9  ;;  %v7794_v5 = vand.u32 4294901760, %v6655_v3 }
 0x361   :  { %5653 = vmatpush1.bf16.msra.mxu0 %v6774_v60  ;;  %5833 = vmatpush1.bf16.msra.mxu1 %v6842_v13  ;;  %v6913_v15 = vpack.c.bf16 %v1843_v33, %v1831_v11  ;;  %v6918_v12 = vpack.c.bf16 %v1861_v21, %v1849_v62  ;;  %v6928_v11 = vpack.c.bf16 %v6854_v63, %v6852_v27  ;;  %v7797_v18 = vand.u32 4294901760, %v6666_v14 }
 0x362   :  { %5655 = vmatprep.subr.bf16.mxu0 %v6780_v61  ;;  %5835 = vmatprep.subr.bf16.mxu1 %v6848_v2  ;;  %v6920_v52 = vpack.c.bf16 %v1867_v39, %v1855_v55  ;;  %v6932_v33 = vpack.c.bf16 %v6864_v8, %v6856_v46  ;;  %7791 = vst [vmem:[#allocation30_spill] sm:$0xff] %v6936_v32  ;;  %7793 = vst [vmem:[#allocation32_spill] sm:$0xff] %v6944_v28  ;;  %v7796_v55 = vand.u32 4294901760, %v6662_v10 }
 0x363   :  { %7789 = vst [vmem:[#allocation28_spill] sm:$0xff] %v6928_v11  ;;  %v6940_v39 = vpack.c.bf16 %v6887_v59, %v6879_v19  ;;  %v6949_v62 = vsub.f32 %v6655_v3, %v7794_v5  ;;  %v6954_v21 = vsub.f32 %v6659_v7, %v7795_v29  ;;  %v6964_v0 = vsub.f32 %v6666_v14, %v7797_v18 }
 0x364   :  { %7790 = vst [vmem:[#allocation29_spill] sm:$0xff] %v6932_v33  ;;  %v6959_v40 = vsub.f32 %v6662_v10, %v7796_v55  ;;  %v7798_v7 = vand.u32 4294901760, %v6669_v16  ;;  %v7799_v10 = vand.u32 4294901760, %v6671_v17  ;;  %v7800_v14 = vand.u32 4294901760, %v6681_v23 }
 0x365   :  { %5657 = vmatpush1.bf16.msra.mxu0 %v6810_v4  ;;  %7792 = vst [vmem:[#allocation31_spill] sm:$0xff] %v6940_v39  ;;  %v7801_v3 = vand.u32 4294901760, %v6683_v24  ;;  %v7807_v42 = vand.u32 4294901760, %v6714_v36  ;;  %v7813_v8 = vand.u32 4294901760, %v6737_v47 }
 0x366   :  { %5659 = vmatprep.subr.bf16.mxu0 %v6814_v57  ;;  %v6973_v29 = vsub.f32 %v6669_v16, %v7798_v7  ;;  %v6978_v55 = vsub.f32 %v6671_v17, %v7799_v10  ;;  %v6983_v18 = vsub.f32 %v6681_v23, %v7800_v14  ;;  %v7802_v7 = vand.u32 4294901760, %v6954_v21 }
 0x367   :  { %v6988_v5 = vsub.f32 %v6683_v24, %v7801_v3  ;;  %v7803_v10 = vand.u32 4294901760, %v6959_v40  ;;  %v7804_v23 = vand.u32 4294901760, %v6964_v0  ;;  %v7021_v24 = vsub.f32 %v6714_v36, %v7807_v42 }
 0x368   :  { %v1722_v17 = vsub.f32 %v6954_v21, %v7802_v7  ;;  %v7806_v7 = vand.u32 4294901760, %v6711_v35  ;;  %v7809_v3 = vand.u32 4294901760, %v6973_v29  ;;  %v7810_v36 = vand.u32 4294901760, %v6978_v55 }
 0x369   :  { %5661 = vmatpush1.bf16.msra.mxu0 %v6826_v43  ;;  %v1728_v31 = vsub.f32 %v6959_v40, %v7803_v10  ;;  %v1740_v14 = vsub.f32 %v6964_v0, %v7804_v23 }
 0x36a   :  { %5663 = vmatprep.subr.bf16.mxu0 %v6834_v6  ;;  %v7013_v10 = vsub.f32 %v6711_v35, %v7806_v7  ;;  %v1723_v58 = vand.u32 4294901760, %v1722_v17  ;;  %v7808_v35 = vand.u32 4294901760, %v6716_v37  ;;  %v1734_v44 = vsub.f32 %v6973_v29, %v7809_v3 }
 0x36b   :  { %v1746_v42 = vsub.f32 %v6978_v55, %v7810_v36  ;;  %v7811_v17 = vand.u32 4294901760, %v6983_v18  ;;  %v7052_v36 = vsub.f32 %v6737_v47, %v7813_v8  ;;  %v7816_v3 = vand.u32 4294901760, %v6743_v50 }
 0x36c   :  { %v7028_v7 = vsub.f32 %v6716_v37, %v7808_v35  ;;  %v7815_v35 = vand.u32 4294901760, %v6741_v49 }
 0x36d   :  { %5665 = vmatpush1.bf16.msra.mxu0 %v6842_v13  ;;  %v1752_v37 = vsub.f32 %v6983_v18, %v7811_v17  ;;  %v7069_v63 = vsub.f32 %v6743_v50, %v7816_v3 }
 0x36e   :  { %5667 = vmatprep.subr.bf16.mxu0 %v6848_v2  ;;  %v7728_v2 = vand.u32 4294901760, %v6949_v62 }
 0x36f   :  { %v1753_v27 = vand.u32 4294901760, %v1752_v37 }
 0x370   :  { %v1710_v16 = vsub.f32 %v6949_v62, %v7728_v2  ;;  %v7805_v2 = vand.u32 4294901760, %v6709_v34 }
 0x372   :  { %v7008_v9 = vsub.f32 %v6709_v34, %v7805_v2  ;;  %v1711_v34 = vand.u32 4294901760, %v1710_v16 }
 0x374   :  { %v7071_v47 = vpack.c.bf16 %v1723_v58, %v1711_v34  ;;  %v7818_v13 = vand.u32 4294901760, %v7008_v9  ;;  %v7820_v58 = vand.u32 4294901760, %v7021_v24 }
 0x376   :  { %v1776_v34 = vsub.f32 %v7021_v24, %v7820_v58 }
 0x427   :  { %v1578_v25 = vpop.f32.mrb[2].mxu0 }
 0x428   :  { %v1595_v59 = vsel %vm1593_vm11, %v1578_v25, 0  ;;  %v2405_v23 = vrot.slane %v1578_v25, 1  ;;  %v5541_v19 = vpop.f32.mrb[3].mxu0  ;;  %2402 = vrot.lane.b32.xlu0 %v1578_v25, %s6496_s11  ;;  %v1729_v25 = vand.u32 4294901760, %v1728_v31 }
 0x429   :  { %v7023_v2 = vand.u32 4294901760, %v1595_v59  ;;  %v1741_v19 = vand.u32 4294901760, %v1740_v14  ;;  %v7812_v14 = vand.u32 4294901760, %v6988_v5 }
 0x42a   :  { %2406 = vrot.lane.b32.xlu1 %v2405_v23, %s6498_s13 }
 0x42b   :  { %v7038_v16 = vsub.f32 %v1595_v59, %v7023_v2  ;;  %v1764_v23 = vsub.f32 %v6988_v5, %v7812_v14  ;;  %v7814_v59 = vand.u32 4294901760, %v6739_v48  ;;  %v7064_v14 = vsub.f32 %v6741_v49, %v7815_v35 }
 0x42c   :  { %v7073_v8 = vpack.c.bf16 %v1741_v19, %v1729_v25  ;;  %v1758_v49 = vsub.f32 %v7008_v9, %v7818_v13  ;;  %v7819_v35 = vand.u32 4294901760, %v7013_v10  ;;  %v7822_v25 = vand.u32 4294901760, %v7052_v36 }
 0x42d   :  { %v7057_v46 = vsub.f32 %v6739_v48, %v7814_v59  ;;  %v7740_v17 = vand.u32 4294901760, %v7038_v16  ;;  %v1735_v48 = vand.u32 4294901760, %v1734_v44  ;;  %v1747_v59 = vand.u32 4294901760, %v1746_v42 }
 0x42e   :  { %7817 = vst [vmem:[#allocation33_spill] sm:$0xff] %v7073_v8  ;;  %v1770_v50 = vsub.f32 %v7013_v10, %v7819_v35  ;;  %v1765_v3 = vand.u32 4294901760, %v1764_v23  ;;  %v7821_v42 = vand.u32 4294901760, %v7028_v7  ;;  %v1759_v23 = vand.u32 4294901760, %v1758_v49 }
 0x42f   :  { %v1693_v31 = vsub.f32 %v7038_v16, %v7740_v17  ;;  %v7744_v17 = vand.u32 4294901760, %v7069_v63  ;;  %v7094_v35 = vpack.c.bf16 %v1747_v59, %v1735_v48  ;;  %v7823_v53 = vand.u32 4294901760, %v7057_v46 }
 0x430   :  { %v1788_v37 = vsub.f32 %v7028_v7, %v7821_v42  ;;  %v7097_v58 = vpack.c.bf16 %v1765_v3, %v1753_v27  ;;  %v1771_v44 = vand.u32 4294901760, %v1770_v50  ;;  %v7824_v13 = vmov 0.0  }
 0x431   :  { %v1694_v19 = vand.u32 4294901760, %v1693_v31  ;;  %v1782_v31 = vsub.f32 %v7052_v36, %v7822_v25  ;;  %v1794_v42 = vsub.f32 %v7057_v46, %v7823_v53  ;;  %v1777_v48 = vand.u32 4294901760, %v1776_v34 }
 0x432   :  { %v1789_v59 = vand.u32 4294901760, %v1788_v37  ;;  %v7825_v49 = vand.u32 4294901760, %v7064_v14  ;;  %v1812_v50 = vsub.f32 %v7069_v63, %v7744_v17  ;;  %v7114_v3 = vpack.c.bf16 %v1771_v44, %v1759_v23  ;;  %v7830_v17 = vld [vmem:[#allocation16_spill] sm:$0xff] }
 0x433   :  { %1695 = vmatmul.mubr.f32.vlgmr.msra.gmra.mrb[4].mxu0 %v1694_v19  ;;  %v1783_v25 = vand.u32 4294901760, %v1782_v31  ;;  %v1795_v53 = vand.u32 4294901760, %v1794_v42  ;;  %v7134_v44 = vpack.c.bf16 %v6954_v21, %v6949_v62  ;;  %v7139_v23 = vpack.c.bf16 %v6964_v0, %v6959_v40 }
 0x434   :  { %5669 = vmatpush1.bf16.msra.mxu0 %v7071_v47  ;;  %1905 = vmatprep.mubr.f32.mxu0 %v7824_v13  ;;  %v1800_v27 = vsub.f32 %v7064_v14, %v7825_v49  ;;  %v7117_v19 = vpack.c.bf16 %v1789_v59, %v1777_v48  ;;  %v1813_v37 = vand.u32 4294901760, %v1812_v50  ;;  %v7145_v31 = vpack.c.bf16 %v6978_v55, %v6973_v29 }
 0x435   :  { %5671 = vmatprep.subr.bf16.mxu0 %v7073_v8  ;;  %v7120_v8 = vpack.c.bf16 %v1795_v53, %v1783_v25  ;;  %v7151_v42 = vpack.c.bf16 %v6988_v5, %v6983_v18  ;;  %v7156_v48 = vpack.c.bf16 %v7013_v10, %v7008_v9  ;;  %v7161_v59 = vpack.c.bf16 %v7028_v7, %v7021_v24  ;;  %v7828_v53 = vld [vmem:[#allocation15_spill] sm:$0xff] }
 0x436   :  { %v1801_v34 = vand.u32 4294901760, %v1800_v27  ;;  %v7166_v27 = vpack.c.bf16 %v7057_v46, %v7052_v36  ;;  %v7171_v50 = vpack.c.bf16 %v7069_v63, %v7064_v14  ;;  %v7827_v25 = vand.u32 4294901760, %v6819_v54 }
 0x437   :  { %v7835_v54 = vand.u32 4294901760, %v7038_v16 }
 0x438   :  { %5673 = vmatpush1.bf16.msra.mxu0 %v7094_v35  ;;  %v7123_v49 = vpack.c.bf16 %v1813_v37, %v1801_v34  ;;  %7826 = vst [vmem:[#allocation34_spill] sm:$0xff] %v7171_v50  ;;  %v7829_v34 = vand.u32 4294901760, %v7828_v53 }
 0x439   :  { %5675 = vmatprep.subr.bf16.mxu0 %v7097_v58 }
 0x43a   :  { %v7199_v37 = vpack.c.bf16 %v7829_v34, %v7827_v25  ;;  %v7836_v25 = vand.u32 4294901760, %v6973_v29  ;;  %v7842_v29 = vand.u32 4294901760, %v7021_v24  ;;  %v7848_v24 = vld [vmem:[#allocation18_spill] sm:$0xff] }
 0x43c   :  { %5677 = vmatpush1.bf16.msra.mxu0 %v7114_v3 }
 0x43d   :  { %5679 = vmatprep.subr.bf16.mxu0 %v7117_v19 }
 0x440   :  { %5681 = vmatpush1.bf16.msra.mxu0 %v7120_v8 }
 0x441   :  { %5683 = vmatprep.subr.bf16.mxu0 %v7123_v49 }
 0x444   :  { %5685 = vmatpush1.bf16.msra.mxu0 %v6891_v45 }
 0x445   :  { %5687 = vmatprep.subr.bf16.mxu0 %v6905_v1 }
 0x448   :  { %5689 = vmatpush1.bf16.msra.mxu0 %v6913_v15 }
 0x449   :  { %5691 = vmatprep.subr.bf16.mxu0 %v6918_v12 }
 0x44c   :  { %5693 = vmatpush1.bf16.msra.mxu0 %v6920_v52 }
 0x44d   :  { %5695 = vmatprep.subr.bf16.mxu0 %v6924_v22 }
 0x44f   :  { %1907 = vmatmul.mubr.f32.vlgmr.msra.gmra.mrb[4].mxu0 %v7023_v2 }
 0x450   :  { %5697 = vmatpush1.bf16.msra.mxu0 %v7134_v44  ;;  %2033 = vmatprep.mubr.f32.mxu0 %v7824_v13 }
 0x451   :  { %5699 = vmatprep.subr.bf16.mxu0 %v7139_v23 }
 0x454   :  { %5701 = vmatpush1.bf16.msra.mxu0 %v7145_v31 }
 0x455   :  { %5703 = vmatprep.subr.bf16.mxu0 %v7151_v42 }
 0x458   :  { %5705 = vmatpush1.bf16.msra.mxu0 %v7156_v48 }
 0x459   :  { %5707 = vmatprep.subr.bf16.mxu0 %v7161_v59 }
 0x45c   :  { %5709 = vmatpush1.bf16.msra.mxu0 %v7166_v27 }
 0x45d   :  { %5711 = vmatprep.subr.bf16.mxu0 %v7171_v50 }
 0x460   :  { %5713 = vmatpush1.bf16.msra.mxu0 %v6928_v11  ;;  %v7834_v11 = vand.u32 4294901760, %v6964_v0  ;;  %v7839_v0 = vand.u32 4294901760, %v6988_v5  ;;  %v7844_v5 = vand.u32 4294901760, %v7052_v36 }
 0x461   :  { %5715 = vmatprep.subr.bf16.mxu0 %v6932_v33  ;;  %v7833_v33 = vand.u32 4294901760, %v6959_v40  ;;  %v7838_v40 = vand.u32 4294901760, %v6983_v18  ;;  %v7845_v18 = vand.u32 4294901760, %v7057_v46  ;;  %v7852_v46 = vld [vmem:[#allocation20_spill] sm:$0xff] }
 0x462   :  { %v7853_v36 = vand.u32 4294901760, %v7852_v46  ;;  %v7867_v46 = vld [vmem:[#allocation26_spill] sm:$0xff] }
 0x463   :  { %v7213_v50 = vpack.c.bf16 %v7834_v11, %v7833_v33  ;;  %v7230_v11 = vpack.c.bf16 %v7839_v0, %v7838_v40  ;;  %v7840_v33 = vand.u32 4294901760, %v7008_v9  ;;  %v7251_v53 = vpack.c.bf16 %v7845_v18, %v7844_v5  ;;  %v7854_v40 = vld [vmem:[#allocation21_spill] sm:$0xff]  ;;  %v7862_v18 = vld [vmem:[#allocation24_spill] sm:$0xff] }
 0x464   :  { %5717 = vmatpush1.bf16.msra.mxu0 %v6936_v32  ;;  %v7846_v9 = vand.u32 4294901760, %v7064_v14  ;;  %v7855_v0 = vand.u32 4294901760, %v7854_v40  ;;  %v3223_v14 = vpop.permute.xlu1 %3222  ;;  %v7869_v40 = vld [vmem:[#allocation27_spill] sm:$0xff] }
 0x465   :  { %5719 = vmatprep.subr.bf16.mxu0 %v6940_v39  ;;  %v7832_v39 = vand.u32 4294901760, %v6954_v21 }
 0x468   :  { %5721 = vmatpush1.bf16.msra.mxu0 %v6944_v28  ;;  %v7831_v28 = vand.u32 4294901760, %v6949_v62  ;;  %v7837_v62 = vand.u32 4294901760, %v6978_v55  ;;  %v7843_v55 = vand.u32 4294901760, %v7028_v7  ;;  %v7849_v7 = vand.u32 4294901760, %v7848_v24 }
 0x469   :  { %5723 = vmatprep.subr.bf16.mxu0 %v6678_v20 }
 0x46a   :  { %v7206_v32 = vpack.c.bf16 %v7832_v39, %v7831_v28  ;;  %v7222_v21 = vpack.c.bf16 %v7837_v62, %v7836_v25  ;;  %v7841_v39 = vand.u32 4294901760, %v7013_v10  ;;  %v7847_v10 = vand.u32 4294901760, %v7069_v63  ;;  %v7857_v63 = vld [vmem:[#allocation22_spill] sm:$0xff] }
 0x46b   :  { %2036 = vmatmul.mubr.f32.vlgmr.msra.gmra.mrb[4].mxu0 %v7038_v16  ;;  %v7244_v16 = vpack.c.bf16 %v7843_v55, %v7842_v29  ;;  %v7859_v29 = vld [vmem:[#allocation23_spill] sm:$0xff] }
 0x46c   :  { %5725 = vmatpush1.bf16.msra.mxu0 %v6695_v26  ;;  %2134 = vmatprep.mubr.f32.mxu0 %v7824_v13  ;;  %v7237_v28 = vpack.c.bf16 %v7841_v39, %v7840_v33  ;;  %v7258_v34 = vpack.c.bf16 %v7847_v10, %v7846_v9  ;;  %v7272_v33 = vpack.c.bf16 %v7855_v0, %v7853_v36  ;;  %v7858_v39 = vand.u32 4294901760, %v7857_v63  ;;  %v7864_v10 = vld [vmem:[#allocation25_spill] sm:$0xff] }
 0x46d   :  { %5727 = vmatprep.subr.bf16.mxu0 %v6705_v30  ;;  %v7860_v55 = vand.u32 4294901760, %v7859_v29  ;;  %v7863_v9 = vand.u32 4294901760, %v7862_v18  ;;  %v7865_v24 = vand.u32 4294901760, %v7864_v10  ;;  %v7868_v36 = vand.u32 4294901760, %v7867_v46  ;;  %v7873_v46 = vld [vmem:[#allocation33_spill] sm:$0xff] }
 0x46e   :  { %7856 = vst [vmem:[#allocation15_spill] sm:$0xff] %v7272_v33  ;;  %v7870_v0 = vand.u32 4294901760, %v7869_v40 }
 0x46f   :  { %v7279_v5 = vpack.c.bf16 %v7860_v55, %v7858_v39 }
 0x470   :  { %5729 = vmatpush1.bf16.msra.mxu0 %v6725_v38  ;;  %v7293_v63 = vpack.c.bf16 %v7870_v0, %v7868_v36 }
 0x471   :  { %5731 = vmatprep.subr.bf16.mxu0 %v6733_v41  ;;  %7861 = vst [vmem:[#allocation16_spill] sm:$0xff] %v7279_v5 }
 0x474   :  { %5733 = vmatpush1.bf16.msra.mxu0 %v6755_v51 }
 0x475   :  { %5735 = vmatprep.subr.bf16.mxu0 %v6764_v56 }
 0x478   :  { %5737 = vmatpush1.bf16.msra.mxu0 %v6774_v60 }
 0x479   :  { %5739 = vmatprep.subr.bf16.mxu0 %v6780_v61 }
 0x47c   :  { %5741 = vmatpush1.bf16.msra.mxu0 %v6810_v4 }
 0x47d   :  { %5743 = vmatprep.subr.bf16.mxu0 %v6814_v57 }
 0x480   :  { %5745 = vmatpush1.bf16.msra.mxu0 %v6826_v43 }
 0x481   :  { %5747 = vmatprep.subr.bf16.mxu0 %v6834_v6 }
 0x484   :  { %5749 = vmatpush1.bf16.msra.mxu0 %v7830_v17 }
 0x485   :  { %5751 = vmatprep.subr.bf16.mxu0 %v7199_v37 }
 0x487   :  { %2138 = vmatmul.mubr.f32.vlgmr.msra.gmra.mrb[4].mxu0 %v7835_v54  ;;  %v7850_v54 = vld [vmem:[#allocation19_spill] sm:$0xff] }
 0x488   :  { %5753 = vmatpush1.bf16.msra.mxu0 %v7206_v32  ;;  %2292 = vmatprep.mubr.f32.mxu0 %v7824_v13  ;;  %v7851_v25 = vand.u32 4294901760, %v7850_v54  ;;  %7871 = vst [vmem:[#allocation19_spill] sm:$0xff] %v7293_v63 }
 0x489   :  { %5755 = vmatprep.subr.bf16.mxu0 %v7213_v50 }
 0x48a   :  { %v7265_v62 = vpack.c.bf16 %v7851_v25, %v7849_v7  ;;  %v7286_v7 = vpack.c.bf16 %v7865_v24, %v7863_v9 }
 0x48c   :  { %5757 = vmatpush1.bf16.msra.mxu0 %v7222_v21  ;;  %7866 = vst [vmem:[#allocation18_spill] sm:$0xff] %v7286_v7 }
 0x48d   :  { %5759 = vmatprep.subr.bf16.mxu0 %v7230_v11 }
 0x490   :  { %5761 = vmatpush1.bf16.msra.mxu0 %v7237_v28 }
 0x491   :  { %5763 = vmatprep.subr.bf16.mxu0 %v7244_v16 }
 0x494   :  { %5765 = vmatpush1.bf16.msra.mxu0 %v7251_v53 }
 0x495   :  { %5767 = vmatprep.subr.bf16.mxu0 %v7258_v34 }
 0x498   :  { %5769 = vmatpush1.bf16.msra.mxu0 %v7265_v62 }
 0x499   :  { %5771 = vmatprep.subr.bf16.mxu0 %v7272_v33 }
 0x49a   :  { %v2403_v54 = vpop.permute.xlu0 %2402 }
 0x49c   :  { %5773 = vmatpush1.bf16.msra.mxu0 %v7279_v5  ;;  %v2407_v25 = vpop.permute.xlu1 %2406 }
 0x49d   :  { %v2410_v39 = vsel %vm2409_vm12, %v2403_v54, %v2407_v25  ;;  %5775 = vmatprep.subr.bf16.mxu0 %v7286_v7  ;;  %v7872_v54 = vld [vmem:[#allocation14_spill] sm:$0xff] }
 0x49e   :  { %v2412_v29 = vsel %vm1593_vm11, %v2410_v39, 0  ;;  %v3225_v25 = vsel %vm77_vm1, %v7872_v54, %v3223_v14  ;;  %v7874_v39 = vmov 0.0|0.0   ;;  %v7876_v54 = vld [vmem:[#allocation11_spill] sm:$0xff] }
 0x49f   :  { %v7298_v55 = vand.u32 4294901760, %v2412_v29  ;;  %v3227_v36 = vsel %vm1119_vm10, %v3225_v25, 0  ;;  %v7878_v25 = vld [vmem:[#allocation34_spill] sm:$0xff] }
 0x4a0   :  { %5777 = vmatpush1.bf16.msra.mxu0 %v7293_v63  ;;  %v7326_v40 = vand.u32 4294901760, %v3227_v36 }
 0x4a1   :  { %v7302_v18 = vsub.f32 %v2412_v29, %v7298_v55  ;;  %5779 = vmatprep.subr.bf16.mxu0 %v6678_v20 }
 0x4a2   :  { %v3297_v14 = vsub.f32 %v3227_v36, %v7326_v40  ;;  %v7879_v36 = vld [vmem:[#allocation28_spill] sm:$0xff] }
 0x4a3   :  { %v2509_v9 = vand.u32 4294901760, %v7302_v18  ;;  %2294 = vmatmul.mubr.f32.vlgmr.msra.gmra.mrb[4].mxu0 %v7023_v2 }
 0x4a4   :  { %5781 = vmatpush1.bf16.msra.mxu0 %v6695_v26  ;;  %2392 = vmatprep.mubr.f32.mxu0 %v7824_v13  ;;  %v3298_v0 = vand.u32 4294901760, %v3297_v14 }
 0x4a5   :  { %5783 = vmatprep.subr.bf16.mxu0 %v6705_v30  ;;  %v2510_v10 = vsub.f32 %v7302_v18, %v2509_v9 }
 0x4a6   :  { %v3299_v29 = vsub.f32 %v3297_v14, %v3298_v0 }
 0x4a7   :  { %v2511_v24 = vand.u32 4294901760, %v2510_v10  ;;  %v7875_v10 = vld [vmem:[#allocation10_spill] sm:$0xff] }
 0x4a8   :  { %5785 = vmatpush1.bf16.msra.mxu0 %v6725_v38 }
 0x4a9   :  { %2512 = vmatmul.mubr.f32.vlgmr.msra.gmra.mrb[4].mxu1 %v2511_v24  ;;  %5787 = vmatprep.subr.bf16.mxu0 %v6733_v41  ;;  %v3300_v24 = vand.u32 4294901760, %v3299_v29  ;;  %v7880_v29 = vld [vmem:[#allocation29_spill] sm:$0xff] }
 0x4aa   :  { %5837 = vmatpush1.bf16.msra.mxu1 %v7071_v47  ;;  %2722 = vmatprep.mubr.f32.mxu1 %v7824_v13 }
 0x4ab   :  { %5839 = vmatprep.subr.bf16.mxu1 %v7873_v46 }
 0x4ac   :  { %5789 = vmatpush1.bf16.msra.mxu0 %v6755_v51 }
 0x4ad   :  { %5791 = vmatprep.subr.bf16.mxu0 %v6764_v56 }
 0x4ae   :  { %5841 = vmatpush1.bf16.msra.mxu1 %v7094_v35 }
 0x4af   :  { %5843 = vmatprep.subr.bf16.mxu1 %v7097_v58 }
 0x4b0   :  { %5793 = vmatpush1.bf16.msra.mxu0 %v6774_v60 }
 0x4b1   :  { %5795 = vmatprep.subr.bf16.mxu0 %v6780_v61 }
 0x4b2   :  { %5845 = vmatpush1.bf16.msra.mxu1 %v7114_v3 }
 0x4b3   :  { %5847 = vmatprep.subr.bf16.mxu1 %v7117_v19 }
 0x4b4   :  { %5797 = vmatpush1.bf16.msra.mxu0 %v6810_v4 }
 0x4b5   :  { %5799 = vmatprep.subr.bf16.mxu0 %v6814_v57 }
 0x4b6   :  { %5849 = vmatpush1.bf16.msra.mxu1 %v7120_v8 }
 0x4b7   :  { %5851 = vmatprep.subr.bf16.mxu1 %v7123_v49 }
 0x4b8   :  { %5801 = vmatpush1.bf16.msra.mxu0 %v6826_v43 }
 0x4b9   :  { %5803 = vmatprep.subr.bf16.mxu0 %v6834_v6 }
 0x4ba   :  { %5853 = vmatpush1.bf16.msra.mxu1 %v6891_v45 }
 0x4bb   :  { %5855 = vmatprep.subr.bf16.mxu1 %v6905_v1 }
 0x4bc   :  { %5805 = vmatpush1.bf16.msra.mxu0 %v7830_v17 }
 0x4bd   :  { %5974 = vmatprep.subr.bf16.mxu0 %v7874_v39 }
 0x4be   :  { %5857 = vmatpush1.bf16.msra.mxu1 %v6913_v15 }
 0x4bf   :  { %2394 = vmatmul.mubr.f32.vlgmr.msra.gmra.mrb[4].mxu0 %v7023_v2  ;;  %5859 = vmatprep.subr.bf16.mxu1 %v6918_v12  ;;  %v7877_v2 = vld [vmem:[#allocation12_spill] sm:$0xff] }
 0x4c0   :  { %5976 = vmatpush3.bf16.msra.mxu0 %v7875_v10  ;;  %5546 = vmatprep.mubr.msk.f32.mxu0 %vm6487_vm0, %v7824_v13 }
 0x4c1   :  { %5977 = vmatprep.subr.bf16.mxu0 %v7874_v39 }
 0x4c2   :  { %5861 = vmatpush1.bf16.msra.mxu1 %v6920_v52 }
 0x4c3   :  { %5547 = vmatmul.mubr.f32.vlgmr.msra.gmra.mrb[6].mxu0 %v3300_v24  ;;  %5863 = vmatprep.subr.bf16.mxu1 %v6924_v22  ;;  %v7881_v24 = vld [vmem:[#allocation30_spill] sm:$0xff] }
 0x4c4   :  { %5979 = vmatpush3.bf16.msra.mxu0 %v7876_v54  ;;  %5553 = vmatprep.mubr.msk.f32.mxu0 %vm6487_vm0, %v7824_v13  ;;  %v7882_v54 = vld [vmem:[#allocation31_spill] sm:$0xff] }
 0x4c5   :  { %2724 = vmatmul.mubr.f32.vlgmr.msra.gmra.mrb[4].mxu1 %v7298_v55  ;;  %5980 = vmatprep.subr.bf16.mxu0 %v7874_v39 }
 0x4c6   :  { %5865 = vmatpush1.bf16.msra.mxu1 %v7134_v44  ;;  %2850 = vmatprep.mubr.f32.mxu1 %v7824_v13 }
 0x4c7   :  { %5867 = vmatprep.subr.bf16.mxu1 %v7139_v23 }
 0x4ca   :  { %5869 = vmatpush1.bf16.msra.mxu1 %v7145_v31 }
 0x4cb   :  { %5554 = vmatmul.mubr.f32.vlgmr.msra.gmra.mrb[6].mxu0 %v7326_v40  ;;  %5871 = vmatprep.subr.bf16.mxu1 %v7151_v42 }
 0x4cc   :  { %5982 = vmatpush3.bf16.msra.mxu0 %v7877_v2  ;;  %5560 = vmatprep.mubr.msk.f32.mxu0 %vm6487_vm0, %v7824_v13  ;;  %v7883_v2 = vld [vmem:[#allocation13_spill] sm:$0xff] }
 0x4cd   :  { %5983 = vmatprep.subr.bf16.mxu0 %v7874_v39 }
 0x4ce   :  { %5873 = vmatpush1.bf16.msra.mxu1 %v7156_v48 }
 0x4cf   :  { %5875 = vmatprep.subr.bf16.mxu1 %v7161_v59 }
 0x4d2   :  { %5877 = vmatpush1.bf16.msra.mxu1 %v7166_v27 }
 0x4d3   :  { %5561 = vmatmul.mubr.f32.vlgmr.msra.gmra.mrb[6].mxu0 %v3297_v14  ;;  %5879 = vmatprep.subr.bf16.mxu1 %v7878_v25  ;;  %v7884_v14 = vld [vmem:[#allocation32_spill] sm:$0xff] }
 0x4d4   :  { %5985 = vmatpush3.bf16.msra.mxu0 %v7875_v10  ;;  %5567 = vmatprep.mubr.msk.f32.mxu0 %vm6487_vm0, %v7824_v13 }
 0x4d5   :  { %5986 = vmatprep.subr.bf16.mxu0 %v7874_v39 }
 0x4d6   :  { %5881 = vmatpush1.bf16.msra.mxu1 %v7879_v36 }
 0x4d7   :  { %5883 = vmatprep.subr.bf16.mxu1 %v7880_v29 }
 0x4da   :  { %5885 = vmatpush1.bf16.msra.mxu1 %v7881_v24 }
 0x4db   :  { %5568 = vmatmul.mubr.f32.vlgmr.msra.gmra.mrb[6].mxu0 %v3298_v0  ;;  %5887 = vmatprep.subr.bf16.mxu1 %v7882_v54  ;;  %v7887_v0 = vld [vmem:[#allocation9_spill] sm:$0xff] }
 0x4dc   :  { %5988 = vmatpush3.bf16.msra.mxu0 %v7883_v2  ;;  %5574 = vmatprep.mubr.msk.f32.mxu0 %vm6487_vm0, %v7824_v13 }
 0x4dd   :  { %5989 = vmatprep.subr.bf16.mxu0 %v7874_v39 }
 0x4de   :  { %5889 = vmatpush1.bf16.msra.mxu1 %v7884_v14 }
 0x4df   :  { %5891 = vmatprep.subr.bf16.mxu1 %v6678_v20 }
 0x4e1   :  { %2853 = vmatmul.mubr.f32.vlgmr.msra.gmra.mrb[4].mxu1 %v7302_v18  ;;  %v7885_v18 = vld [vmem:[#allocation17_spill] sm:$0xff] }
 0x4e2   :  { %5893 = vmatpush1.bf16.msra.mxu1 %v6695_v26  ;;  %2951 = vmatprep.mubr.f32.mxu1 %v7824_v13 }
 0x4e3   :  { %5575 = vmatmul.mubr.f32.vlgmr.msra.gmra.mrb[6].mxu0 %v7326_v40  ;;  %5895 = vmatprep.subr.bf16.mxu1 %v6705_v30 }
 0x4e4   :  { %5991 = vmatpush3.bf16.msra.mxu0 %v7875_v10  ;;  %5581 = vmatprep.mubr.msk.f32.mxu0 %vm6487_vm0, %v7824_v13 }
 0x4e5   :  { %6161 = vmatprep.subr.bf16.mxu0 %v6678_v20 }
 0x4e6   :  { %5897 = vmatpush1.bf16.msra.mxu1 %v6725_v38 }
 0x4e7   :  { %5899 = vmatprep.subr.bf16.mxu1 %v6733_v41 }
 0x4ea   :  { %5901 = vmatpush1.bf16.msra.mxu1 %v6755_v51 }
 0x4eb   :  { %5582 = vmatmul.mubr.f32.vlgmr.msra.gmra.mrb[6].mxu0 %v7326_v40  ;;  %5903 = vmatprep.subr.bf16.mxu1 %v6764_v56 }
 0x4ec   :  { %6163 = vmatpush1.bf16.msra.mxu0 %v6695_v26  ;;  %4600 = vmatprep.mubr.f32.mxu0 %v7824_v13 }
 0x4ed   :  { %6165 = vmatprep.subr.bf16.mxu0 %v6705_v30 }
 0x4ee   :  { %5905 = vmatpush1.bf16.msra.mxu1 %v6774_v60 }
 0x4ef   :  { %5907 = vmatprep.subr.bf16.mxu1 %v6780_v61 }
 0x4f0   :  { %6167 = vmatpush1.bf16.msra.mxu0 %v6725_v38 }
 0x4f1   :  { %6169 = vmatprep.subr.bf16.mxu0 %v6733_v41 }
 0x4f2   :  { %5909 = vmatpush1.bf16.msra.mxu1 %v6810_v4 }
 0x4f3   :  { %5911 = vmatprep.subr.bf16.mxu1 %v6814_v57 }
 0x4f4   :  { %6171 = vmatpush1.bf16.msra.mxu0 %v6755_v51 }
 0x4f5   :  { %6173 = vmatprep.subr.bf16.mxu0 %v6764_v56 }
 0x4f6   :  { %5913 = vmatpush1.bf16.msra.mxu1 %v6826_v43 }
 0x4f7   :  { %5915 = vmatprep.subr.bf16.mxu1 %v6834_v6 }
 0x4f8   :  { %6175 = vmatpush1.bf16.msra.mxu0 %v6774_v60 }
 0x4f9   :  { %6177 = vmatprep.subr.bf16.mxu0 %v6780_v61 }
 0x4fa   :  { %5917 = vmatpush1.bf16.msra.mxu1 %v7830_v17 }
 0x4fb   :  { %5919 = vmatprep.subr.bf16.mxu1 %v7199_v37 }
 0x4fc   :  { %6179 = vmatpush1.bf16.msra.mxu0 %v6810_v4 }
 0x4fd   :  { %2955 = vmatmul.mubr.f32.vlgmr.msra.gmra.mrb[4].mxu1 %v2509_v9  ;;  %6181 = vmatprep.subr.bf16.mxu0 %v6814_v57  ;;  %v7886_v9 = vld [vmem:[#allocation8_spill] sm:$0xff] }
 0x4fe   :  { %5921 = vmatpush1.bf16.msra.mxu1 %v7206_v32  ;;  %3109 = vmatprep.mubr.f32.mxu1 %v7824_v13  ;;  %v1589_v40 = vsub.s32 1, %v7886_v9 }
 0x4ff   :  { %5923 = vmatprep.subr.bf16.mxu1 %v7213_v50 }
 0x500   :  { %6183 = vmatpush1.bf16.msra.mxu0 %v6826_v43 }
 0x501   :  { %6185 = vmatprep.subr.bf16.mxu0 %v6834_v6 }
 0x502   :  { %5925 = vmatpush1.bf16.msra.mxu1 %v7222_v21 }
 0x503   :  { %5927 = vmatprep.subr.bf16.mxu1 %v7230_v11 }
 0x504   :  { %6187 = vmatpush1.bf16.msra.mxu0 %v7830_v17 }
 0x505   :  { %6189 = vmatprep.subr.bf16.mxu0 %v7885_v18 }
 0x506   :  { %5929 = vmatpush1.bf16.msra.mxu1 %v7237_v28 }
 0x507   :  { %5931 = vmatprep.subr.bf16.mxu1 %v7244_v16 }
 0x50a   :  { %5933 = vmatpush1.bf16.msra.mxu1 %v7251_v53 }
 0x50b   :  { %5935 = vmatprep.subr.bf16.mxu1 %v7258_v34 }
 0x50e   :  { %5937 = vmatpush1.bf16.msra.mxu1 %v7265_v62 }
 0x50f   :  { %5939 = vmatprep.subr.bf16.mxu1 %v7272_v33 }
 0x512   :  { %5941 = vmatpush1.bf16.msra.mxu1 %v7279_v5 }
 0x513   :  { %5943 = vmatprep.subr.bf16.mxu1 %v7286_v7 }
 0x516   :  { %5945 = vmatpush1.bf16.msra.mxu1 %v7293_v63 }
 0x517   :  { %5947 = vmatprep.subr.bf16.mxu1 %v6678_v20 }
 0x519   :  { %3111 = vmatmul.mubr.f32.vlgmr.msra.gmra.mrb[4].mxu1 %v7298_v55 }
 0x51a   :  { %5949 = vmatpush1.bf16.msra.mxu1 %v6695_v26  ;;  %3209 = vmatprep.mubr.f32.mxu1 %v7824_v13 }
 0x51b   :  { %5951 = vmatprep.subr.bf16.mxu1 %v6705_v30 }
 0x51e   :  { %5953 = vmatpush1.bf16.msra.mxu1 %v6725_v38 }
 0x51f   :  { %5955 = vmatprep.subr.bf16.mxu1 %v6733_v41 }
 0x522   :  { %5957 = vmatpush1.bf16.msra.mxu1 %v6755_v51 }
 0x523   :  { %5959 = vmatprep.subr.bf16.mxu1 %v6764_v56 }
 0x526   :  { %5961 = vmatpush1.bf16.msra.mxu1 %v6774_v60 }
 0x527   :  { %5963 = vmatprep.subr.bf16.mxu1 %v6780_v61 }
 0x52a   :  { %5965 = vmatpush1.bf16.msra.mxu1 %v6810_v4 }
 0x52b   :  { %5967 = vmatprep.subr.bf16.mxu1 %v6814_v57 }
 0x52e   :  { %5969 = vmatpush1.bf16.msra.mxu1 %v6826_v43 }
 0x52f   :  { %5971 = vmatprep.subr.bf16.mxu1 %v6834_v6 }
 0x532   :  { %5973 = vmatpush1.bf16.msra.mxu1 %v7830_v17 }
 0x533   :  { %5993 = vmatprep.subr.bf16.mxu1 %v6678_v20 }
 0x535   :  { %3211 = vmatmul.mubr.f32.vlgmr.msra.gmra.mrb[4].mxu1 %v7298_v55  ;;  %v75_v55 = vld [vmem:[#allocation4 + $0x170] ss:$8 sm:$0x3] }
 0x536   :  { %5995 = vmatpush1.bf16.msra.mxu1 %v6695_v26  ;;  %3783 = vmatprep.mubr.f32.mxu1 %v7824_v13  ;;  %v7472_v39 = vrot.slane %v75_v55, %v7887_v0  ;;  %v7474_v10 = vrot.slane %v75_v55, %v1589_v40 }
 0x537   :  { %5997 = vmatprep.subr.bf16.mxu1 %v6705_v30 }
 0x538   :  { %7888 = vst [vmem:[#allocation20_spill] sm:$0xff] %v7472_v39  ;;  %7889 = vst [vmem:[#allocation21_spill] sm:$0xff] %v7474_v10 }
 0x53a   :  { %5999 = vmatpush1.bf16.msra.mxu1 %v6725_v38 }
 0x53b   :  { %6001 = vmatprep.subr.bf16.mxu1 %v6733_v41 }
 0x53e   :  { %6003 = vmatpush1.bf16.msra.mxu1 %v6755_v51 }
 0x53f   :  { %6005 = vmatprep.subr.bf16.mxu1 %v6764_v56 }
 0x542   :  { %6007 = vmatpush1.bf16.msra.mxu1 %v6774_v60 }
 0x543   :  { %6009 = vmatprep.subr.bf16.mxu1 %v6780_v61 }
 0x546   :  { %6011 = vmatpush1.bf16.msra.mxu1 %v6810_v4 }
 0x547   :  { %6013 = vmatprep.subr.bf16.mxu1 %v6814_v57 }
 0x54a   :  { %6015 = vmatpush1.bf16.msra.mxu1 %v6826_v43 }
 0x54b   :  { %6017 = vmatprep.subr.bf16.mxu1 %v6834_v6 }
 0x54e   :  { %6019 = vmatpush1.bf16.msra.mxu1 %v7830_v17 }
 0x54f   :  { %6021 = vmatprep.subr.bf16.mxu1 %v7885_v18 }
 0x592   :  { %v2395_v2 = vpop.f32.mrb[4].mxu0 }
 0x593   :  { %v6331_v63 = vadd.f32 %v2395_v2, %v7472_v39  ;;  %v2397_v7 = vpop.f32.mrb[5].mxu0 }
 0x594   :  { %v6332_v5 = vadd.f32 %v2397_v7, %v7474_v10 }
 0x595   :  { %2400 = vst [vmem:[%s7684_s2] sm:$0x3f] %v6331_v63 }
 0x596   :  { %2401 = vst [vmem:[%s7684_s2 + $0x8] sm:$0x3f] %v6332_v5 }
 0x5be   :  { %v3684_v18 = vpop.f32.mrb[6].mxu0 }
 0x5bf   :  { %v3689_v9 = vsel %vm1593_vm11, %v3684_v18, 0  ;;  %v4500_v0 = vrot.slane %v3684_v18, 1  ;;  %4497 = vrot.lane.b32.xlu0 %v3684_v18, %s6496_s11  ;;  %v5583_v55 = vpop.f32.mrb[7].mxu0 }
 0x5c0   :  { %v7486_v40 = vand.u32 4294901760, %v3689_v9 }
 0x5c1   :  { %4501 = vrot.lane.b32.xlu1 %v4500_v0, %s6498_s13  ;;  %v7890_v0 = vld [vmem:[#allocation15_spill] sm:$0xff] }
 0x5c2   :  { %v3785_v7 = vsub.f32 %v3689_v9, %v7486_v40 }
 0x5c4   :  { %v3786_v2 = vand.u32 4294901760, %v3785_v7 }
 0x5c6   :  { %v3787_v33 = vsub.f32 %v3785_v7, %v3786_v2 }
 0x5c8   :  { %v3788_v63 = vand.u32 4294901760, %v3787_v33 }
 0x5ca   :  { %3789 = vmatmul.mubr.f32.vlgmr.msra.gmra.mrb[6].mxu1 %v3788_v63 }
 0x5cb   :  { %6023 = vmatpush1.bf16.msra.mxu1 %v7071_v47  ;;  %3999 = vmatprep.mubr.f32.mxu1 %v7824_v13 }
 0x5cc   :  { %6025 = vmatprep.subr.bf16.mxu1 %v7873_v46 }
 0x5cf   :  { %6027 = vmatpush1.bf16.msra.mxu1 %v7094_v35 }
 0x5d0   :  { %6029 = vmatprep.subr.bf16.mxu1 %v7097_v58 }
 0x5d3   :  { %6031 = vmatpush1.bf16.msra.mxu1 %v7114_v3 }
 0x5d4   :  { %6033 = vmatprep.subr.bf16.mxu1 %v7117_v19 }
 0x5d7   :  { %6035 = vmatpush1.bf16.msra.mxu1 %v7120_v8 }
 0x5d8   :  { %6037 = vmatprep.subr.bf16.mxu1 %v7123_v49 }
 0x5db   :  { %6039 = vmatpush1.bf16.msra.mxu1 %v6891_v45 }
 0x5dc   :  { %6041 = vmatprep.subr.bf16.mxu1 %v6905_v1 }
 0x5df   :  { %6043 = vmatpush1.bf16.msra.mxu1 %v6913_v15 }
 0x5e0   :  { %6045 = vmatprep.subr.bf16.mxu1 %v6918_v12 }
 0x5e3   :  { %6047 = vmatpush1.bf16.msra.mxu1 %v6920_v52 }
 0x5e4   :  { %6049 = vmatprep.subr.bf16.mxu1 %v6924_v22 }
 0x5e6   :  { %4001 = vmatmul.mubr.f32.vlgmr.msra.gmra.mrb[6].mxu1 %v7486_v40 }
 0x5e7   :  { %6051 = vmatpush1.bf16.msra.mxu1 %v7134_v44  ;;  %4127 = vmatprep.mubr.f32.mxu1 %v7824_v13 }
 0x5e8   :  { %6053 = vmatprep.subr.bf16.mxu1 %v7139_v23 }
 0x5eb   :  { %6055 = vmatpush1.bf16.msra.mxu1 %v7145_v31 }
 0x5ec   :  { %6057 = vmatprep.subr.bf16.mxu1 %v7151_v42 }
 0x5ef   :  { %6059 = vmatpush1.bf16.msra.mxu1 %v7156_v48 }
 0x5f0   :  { %6061 = vmatprep.subr.bf16.mxu1 %v7161_v59 }
 0x5f3   :  { %6063 = vmatpush1.bf16.msra.mxu1 %v7166_v27 }
 0x5f4   :  { %6065 = vmatprep.subr.bf16.mxu1 %v7878_v25 }
 0x5f7   :  { %6067 = vmatpush1.bf16.msra.mxu1 %v7879_v36 }
 0x5f8   :  { %6069 = vmatprep.subr.bf16.mxu1 %v7880_v29 }
 0x5fb   :  { %6071 = vmatpush1.bf16.msra.mxu1 %v7881_v24 }
 0x5fc   :  { %6073 = vmatprep.subr.bf16.mxu1 %v7882_v54 }
 0x5ff   :  { %6075 = vmatpush1.bf16.msra.mxu1 %v7884_v14 }
 0x600   :  { %6077 = vmatprep.subr.bf16.mxu1 %v6678_v20 }
 0x602   :  { %4130 = vmatmul.mubr.f32.vlgmr.msra.gmra.mrb[6].mxu1 %v3785_v7  ;;  %v7891_v7 = vld [vmem:[#allocation16_spill] sm:$0xff] }
 0x603   :  { %6079 = vmatpush1.bf16.msra.mxu1 %v6695_v26  ;;  %4228 = vmatprep.mubr.f32.mxu1 %v7824_v13 }
 0x604   :  { %6081 = vmatprep.subr.bf16.mxu1 %v6705_v30 }
 0x607   :  { %6083 = vmatpush1.bf16.msra.mxu1 %v6725_v38 }
 0x608   :  { %v3212_v33 = vpop.f32.mrb[4].mxu1  ;;  %6085 = vmatprep.subr.bf16.mxu1 %v6733_v41 }
 0x609   :  { %v6333_v5 = vadd.f32 %v3212_v33, %v7472_v39  ;;  %v3214_v18 = vpop.f32.mrb[5].mxu1  ;;  %v7892_v33 = vld [vmem:[#allocation18_spill] sm:$0xff] }
 0x60a   :  { %v6334_v9 = vadd.f32 %v3214_v18, %v7474_v10 }
 0x60b   :  { %5320 = vst [vmem:[%s7684_s2 + $0x10] sm:$0x3f] %v6333_v5  ;;  %6087 = vmatpush1.bf16.msra.mxu1 %v6755_v51 }
 0x60c   :  { %5321 = vst [vmem:[%s7684_s2 + $0x18] sm:$0x3f] %v6334_v9  ;;  %6089 = vmatprep.subr.bf16.mxu1 %v6764_v56  ;;  %v7893_v9 = vld [vmem:[#allocation19_spill] sm:$0xff] }
 0x60f   :  { %6091 = vmatpush1.bf16.msra.mxu1 %v6774_v60 }
 0x610   :  { %6093 = vmatprep.subr.bf16.mxu1 %v6780_v61 }
 0x613   :  { %6095 = vmatpush1.bf16.msra.mxu1 %v6810_v4 }
 0x614   :  { %6097 = vmatprep.subr.bf16.mxu1 %v6814_v57 }
 0x617   :  { %6099 = vmatpush1.bf16.msra.mxu1 %v6826_v43 }
 0x618   :  { %6101 = vmatprep.subr.bf16.mxu1 %v6834_v6 }
 0x61b   :  { %6103 = vmatpush1.bf16.msra.mxu1 %v7830_v17 }
 0x61c   :  { %6105 = vmatprep.subr.bf16.mxu1 %v7199_v37 }
 0x61e   :  { %4232 = vmatmul.mubr.f32.vlgmr.msra.gmra.mrb[6].mxu1 %v3786_v2 }
 0x61f   :  { %6107 = vmatpush1.bf16.msra.mxu1 %v7206_v32  ;;  %4386 = vmatprep.mubr.f32.mxu1 %v7824_v13 }
 0x620   :  { %6109 = vmatprep.subr.bf16.mxu1 %v7213_v50 }
 0x623   :  { %6111 = vmatpush1.bf16.msra.mxu1 %v7222_v21 }
 0x624   :  { %6113 = vmatprep.subr.bf16.mxu1 %v7230_v11 }
 0x627   :  { %6115 = vmatpush1.bf16.msra.mxu1 %v7237_v28 }
 0x628   :  { %6117 = vmatprep.subr.bf16.mxu1 %v7244_v16 }
 0x62b   :  { %6119 = vmatpush1.bf16.msra.mxu1 %v7251_v53 }
 0x62c   :  { %6121 = vmatprep.subr.bf16.mxu1 %v7258_v34 }
 0x62f   :  { %6123 = vmatpush1.bf16.msra.mxu1 %v7265_v62 }
 0x630   :  { %6125 = vmatprep.subr.bf16.mxu1 %v7890_v0 }
 0x631   :  { %v4498_v55 = vpop.permute.xlu0 %4497 }
 0x633   :  { %6127 = vmatpush1.bf16.msra.mxu1 %v7891_v7  ;;  %v4502_v2 = vpop.permute.xlu1 %4501 }
 0x634   :  { %v4504_v63 = vsel %vm2409_vm12, %v4498_v55, %v4502_v2  ;;  %6129 = vmatprep.subr.bf16.mxu1 %v7892_v33 }
 0x635   :  { %v4506_v5 = vsel %vm1593_vm11, %v4504_v63, 0 }
 0x636   :  { %v7559_v18 = vand.u32 4294901760, %v4506_v5 }
 0x637   :  { %6131 = vmatpush1.bf16.msra.mxu1 %v7893_v9 }
 0x638   :  { %v7563_v10 = vsub.f32 %v4506_v5, %v7559_v18  ;;  %6133 = vmatprep.subr.bf16.mxu1 %v6678_v20 }
 0x63a   :  { %v4603_v39 = vand.u32 4294901760, %v7563_v10  ;;  %4388 = vmatmul.mubr.f32.vlgmr.msra.gmra.mrb[6].mxu1 %v7486_v40 }
 0x63b   :  { %6135 = vmatpush1.bf16.msra.mxu1 %v6695_v26  ;;  %4486 = vmatprep.mubr.f32.mxu1 %v7824_v13 }
 0x63c   :  { %6137 = vmatprep.subr.bf16.mxu1 %v6705_v30  ;;  %v4604_v55 = vsub.f32 %v7563_v10, %v4603_v39 }
 0x63e   :  { %v4605_v2 = vand.u32 4294901760, %v4604_v55 }
 0x63f   :  { %6139 = vmatpush1.bf16.msra.mxu1 %v6725_v38 }
 0x640   :  { %4606 = vmatmul.mubr.f32.vlgmr.msra.gmra.mrb[8].mxu0 %v4605_v2  ;;  %6141 = vmatprep.subr.bf16.mxu1 %v6733_v41 }
 0x641   :  { %6191 = vmatpush1.bf16.msra.mxu0 %v7071_v47  ;;  %4816 = vmatprep.mubr.f32.mxu0 %v7824_v13 }
 0x642   :  { %6193 = vmatprep.subr.bf16.mxu0 %v7873_v46 }
 0x643   :  { %6143 = vmatpush1.bf16.msra.mxu1 %v6755_v51 }
 0x644   :  { %6145 = vmatprep.subr.bf16.mxu1 %v6764_v56 }
 0x645   :  { %6195 = vmatpush1.bf16.msra.mxu0 %v7094_v35 }
 0x646   :  { %6197 = vmatprep.subr.bf16.mxu0 %v7097_v58 }
 0x647   :  { %6147 = vmatpush1.bf16.msra.mxu1 %v6774_v60 }
 0x648   :  { %6149 = vmatprep.subr.bf16.mxu1 %v6780_v61 }
 0x649   :  { %6199 = vmatpush1.bf16.msra.mxu0 %v7114_v3 }
 0x64a   :  { %6201 = vmatprep.subr.bf16.mxu0 %v7117_v19 }
 0x64b   :  { %6151 = vmatpush1.bf16.msra.mxu1 %v6810_v4 }
 0x64c   :  { %6153 = vmatprep.subr.bf16.mxu1 %v6814_v57 }
 0x64d   :  { %6203 = vmatpush1.bf16.msra.mxu0 %v7120_v8 }
 0x64e   :  { %6205 = vmatprep.subr.bf16.mxu0 %v7123_v49 }
 0x64f   :  { %6155 = vmatpush1.bf16.msra.mxu1 %v6826_v43 }
 0x650   :  { %6157 = vmatprep.subr.bf16.mxu1 %v6834_v6 }
 0x651   :  { %6207 = vmatpush1.bf16.msra.mxu0 %v6891_v45 }
 0x652   :  { %6209 = vmatprep.subr.bf16.mxu0 %v6905_v1 }
 0x653   :  { %6159 = vmatpush1.bf16.msra.mxu1 %v7830_v17 }
 0x655   :  { %6211 = vmatpush1.bf16.msra.mxu0 %v6913_v15 }
 0x656   :  { %4488 = vmatmul.mubr.f32.vlgmr.msra.gmra.mrb[6].mxu1 %v7486_v40  ;;  %6213 = vmatprep.subr.bf16.mxu0 %v6918_v12 }
 0x659   :  { %6215 = vmatpush1.bf16.msra.mxu0 %v6920_v52 }
 0x65a   :  { %6217 = vmatprep.subr.bf16.mxu0 %v6924_v22 }
 0x65c   :  { %4818 = vmatmul.mubr.f32.vlgmr.msra.gmra.mrb[8].mxu0 %v7559_v18 }
 0x65d   :  { %6219 = vmatpush1.bf16.msra.mxu0 %v7134_v44  ;;  %4944 = vmatprep.mubr.f32.mxu0 %v7824_v13 }
 0x65e   :  { %6221 = vmatprep.subr.bf16.mxu0 %v7139_v23 }
 0x661   :  { %6223 = vmatpush1.bf16.msra.mxu0 %v7145_v31 }
 0x662   :  { %6225 = vmatprep.subr.bf16.mxu0 %v7151_v42 }
 0x665   :  { %6227 = vmatpush1.bf16.msra.mxu0 %v7156_v48 }
 0x666   :  { %6229 = vmatprep.subr.bf16.mxu0 %v7161_v59 }
 0x669   :  { %6231 = vmatpush1.bf16.msra.mxu0 %v7166_v27 }
 0x66a   :  { %6233 = vmatprep.subr.bf16.mxu0 %v7878_v25 }
 0x66d   :  { %6235 = vmatpush1.bf16.msra.mxu0 %v7879_v36 }
 0x66e   :  { %6237 = vmatprep.subr.bf16.mxu0 %v7880_v29 }
 0x671   :  { %6239 = vmatpush1.bf16.msra.mxu0 %v7881_v24 }
 0x672   :  { %6241 = vmatprep.subr.bf16.mxu0 %v7882_v54 }
 0x675   :  { %6243 = vmatpush1.bf16.msra.mxu0 %v7884_v14 }
 0x676   :  { %6245 = vmatprep.subr.bf16.mxu0 %v6678_v20 }
 0x678   :  { %4947 = vmatmul.mubr.f32.vlgmr.msra.gmra.mrb[8].mxu0 %v7563_v10 }
 0x679   :  { %6247 = vmatpush1.bf16.msra.mxu0 %v6695_v26  ;;  %5045 = vmatprep.mubr.f32.mxu0 %v7824_v13 }
 0x67a   :  { %6249 = vmatprep.subr.bf16.mxu0 %v6705_v30 }
 0x67d   :  { %6251 = vmatpush1.bf16.msra.mxu0 %v6725_v38 }
 0x67e   :  { %6253 = vmatprep.subr.bf16.mxu0 %v6733_v41 }
 0x681   :  { %6255 = vmatpush1.bf16.msra.mxu0 %v6755_v51 }
 0x682   :  { %6257 = vmatprep.subr.bf16.mxu0 %v6764_v56 }
 0x685   :  { %6259 = vmatpush1.bf16.msra.mxu0 %v6774_v60 }
 0x686   :  { %6261 = vmatprep.subr.bf16.mxu0 %v6780_v61 }
 0x689   :  { %6263 = vmatpush1.bf16.msra.mxu0 %v6810_v4 }
 0x68a   :  { %6265 = vmatprep.subr.bf16.mxu0 %v6814_v57 }
 0x68d   :  { %6267 = vmatpush1.bf16.msra.mxu0 %v6826_v43 }
 0x68e   :  { %6269 = vmatprep.subr.bf16.mxu0 %v6834_v6 }
 0x691   :  { %6271 = vmatpush1.bf16.msra.mxu0 %v7830_v17 }
 0x692   :  { %6273 = vmatprep.subr.bf16.mxu0 %v7199_v37 }
 0x694   :  { %5049 = vmatmul.mubr.f32.vlgmr.msra.gmra.mrb[8].mxu0 %v4603_v39 }
 0x695   :  { %6275 = vmatpush1.bf16.msra.mxu0 %v7206_v32  ;;  %5203 = vmatprep.mubr.f32.mxu0 %v7824_v13 }
 0x696   :  { %6277 = vmatprep.subr.bf16.mxu0 %v7213_v50 }
 0x699   :  { %6279 = vmatpush1.bf16.msra.mxu0 %v7222_v21 }
 0x69a   :  { %6281 = vmatprep.subr.bf16.mxu0 %v7230_v11 }
 0x69d   :  { %6283 = vmatpush1.bf16.msra.mxu0 %v7237_v28 }
 0x69e   :  { %6285 = vmatprep.subr.bf16.mxu0 %v7244_v16 }
 0x6a1   :  { %6287 = vmatpush1.bf16.msra.mxu0 %v7251_v53 }
 0x6a2   :  { %6289 = vmatprep.subr.bf16.mxu0 %v7258_v34 }
 0x6a5   :  { %6291 = vmatpush1.bf16.msra.mxu0 %v7265_v62 }
 0x6a6   :  { %6293 = vmatprep.subr.bf16.mxu0 %v7890_v0 }
 0x6a9   :  { %6295 = vmatpush1.bf16.msra.mxu0 %v7891_v7 }
 0x6aa   :  { %6297 = vmatprep.subr.bf16.mxu0 %v7892_v33 }
 0x6ad   :  { %6299 = vmatpush1.bf16.msra.mxu0 %v7893_v9 }
 0x6ae   :  { %6301 = vmatprep.subr.bf16.mxu0 %v6678_v20  ;;  %v7894_v20 = vld [vmem:[#allocation20_spill] sm:$0xff] }
 0x6b0   :  { %5205 = vmatmul.mubr.f32.vlgmr.msra.gmra.mrb[8].mxu0 %v7559_v18 }
 0x6b1   :  { %6303 = vmatpush1.bf16.msra.mxu0 %v6695_v26  ;;  %5303 = vmatprep.mubr.f32.mxu0 %v7824_v13 }
 0x6b2   :  { %6305 = vmatprep.subr.bf16.mxu0 %v6705_v30 }
 0x6b5   :  { %6307 = vmatpush1.bf16.msra.mxu0 %v6725_v38  ;;  %v7895_v38 = vld [vmem:[#allocation21_spill] sm:$0xff] }
 0x6b6   :  { %6309 = vmatprep.subr.bf16.mxu0 %v6733_v41 }
 0x6b9   :  { %6311 = vmatpush1.bf16.msra.mxu0 %v6755_v51 }
 0x6ba   :  { %6313 = vmatprep.subr.bf16.mxu0 %v6764_v56 }
 0x6bd   :  { %6315 = vmatpush1.bf16.msra.mxu0 %v6774_v60 }
 0x6be   :  { %6317 = vmatprep.subr.bf16.mxu0 %v6780_v61 }
 0x6c1   :  { %6319 = vmatpush1.bf16.msra.mxu0 %v6810_v4 }
 0x6c2   :  { %6321 = vmatprep.subr.bf16.mxu0 %v6814_v57 }
 0x6c5   :  { %6323 = vmatpush1.bf16.msra.mxu0 %v6826_v43 }
 0x6c6   :  { %6325 = vmatprep.subr.bf16.mxu0 %v6834_v6 }
 0x6c9   :  { %6327 = vmatpush1.bf16.msra.mxu0 %v7830_v17 }
 0x6cc   :  { %5305 = vmatmul.mubr.f32.vlgmr.msra.gmra.mrb[8].mxu0 %v7559_v18 }
 0x729   :  { %v4489_v45 = vpop.f32.mrb[6].mxu1 }
 0x72a   :  { %v6335_v26 = vadd.f32 %v4489_v45, %v7894_v20  ;;  %v4491_v30 = vpop.f32.mrb[7].mxu1 }
 0x72b   :  { %v6336_v41 = vadd.f32 %v4491_v30, %v7895_v38 }
 0x72c   :  { %5322 = vst [vmem:[%s7684_s2 + $0x20] sm:$0x3f] %v6335_v26 }
 0x72d   :  { %5323 = vst [vmem:[%s7684_s2 + $0x28] sm:$0x3f] %v6336_v41 }
 0x79f   :  { %v5306_v43 = vpop.f32.mrb[8].mxu0 }
 0x7a0   :  { %v6337_v51 = vadd.f32 %v5306_v43, %v7894_v20  ;;  %v5308_v56 = vpop.f32.mrb[9].mxu0 }
 0x7a1   :  { %v6338_v57 = vadd.f32 %v5308_v56, %v7895_v38 }
 0x7a2   :  { %5324 = vst [vmem:[%s7684_s2 + $0x30] sm:$0x3f] %v6337_v51 }
 0x7a3   :  { %5325 = vst [vmem:[%s7684_s2 + $0x38] sm:$0x3f] %v6338_v57 }
 0x7a4   :  { %5318 = vsyncpa [#allocation3], 1 }
 0x7a5   :  { %5319 = vsyncpa [#allocation5], 1 }

</bundles_post_ra>
